<compile_context>
chip_gen: v7x
topology: tpu7x:2x2x1
jax: 0.10.0
libtpu: 0.0.40
codegen_flags: <defaults>
</compile_context>

<pallas_src>
import functools

import jax
import jax.numpy as jnp
from jax.experimental import pallas as pl
from jax.experimental.pallas import tpu as pltpu


def autopad(kernel_size, padding=None, dilation=1):
    """Same-shape padding helper, mirroring the PyTorch version."""
    if dilation > 1:
        kernel_size = (dilation * (kernel_size - 1) + 1 if isinstance(kernel_size, int)
                       else [dilation * (x - 1) + 1 for x in kernel_size])
    if padding is None:
        padding = (kernel_size // 2 if isinstance(kernel_size, int)
                   else [x // 2 for x in kernel_size])
    return padding


def _pair(v):
    if isinstance(v, (tuple, list)):
        assert len(v) == 2
        return int(v[0]), int(v[1])
    return int(v), int(v)


def _round_up(x, m):
    return (x + m - 1) // m * m


def _vmem_limit_bytes():
    """Generation-aware scoped-VMEM limit: physical capacity minus headroom, clamped."""
    cap = None
    try:
        info = pltpu.get_tpu_info()
        for name in ("vmem_capacity_bytes", "vmem_size_bytes", "vmem_bytes"):
            cap = getattr(info, name, None)
            if cap:
                break
    except Exception:
        cap = None
    if not cap:
        cap = 64 << 20  # conservative default: v7x per-TensorCore physical VMEM
    # v7x (64 MiB) -> 48 MiB; v5e/v6e (128 MiB) -> 110 MiB.
    return int(max(32 << 20, min(int(cap) - (16 << 20), 110 << 20)))


def _pick_h_tile(Ho, Wo_p, cout_g, acc_budget_bytes=128 << 10):
    """Largest output-row tile whose f32 register accumulator stays under the budget."""
    per_row = Wo_p * cout_g * 4
    return max(1, min(Ho, acc_budget_bytes // per_row))


def _conv2d_kernel(x_ref, w_ref, b_ref, o_ref, *,
                   KH, KW, Ho_t, Wo, sh, sw, dh, dw, cin_g, cout_g):
    # x_ref: (Hp, Wp, cin_g)        one batch element, one group (resident across row tiles)
    # w_ref: (KH*KW, cin_g, cout_g) this group's weights (compute dtype)
    # b_ref: (1, cout_g) f32        this group's bias
    # o_ref: (Ho_t, Wo, cout_g)     output row tile
    h = pl.program_id(2)
    row0 = pl.multiple_of(h * (Ho_t * sh), Ho_t * sh)

    # Per-tap MXU dots, statically unrolled (KH*KW small).  Accumulate in a traced f32
    # value (vregs; MRB in-place accumulation on v7x) and store the tile once at the end —
    # no per-tap VMEM accumulator round-trip.
    acc = None
    for kh in range(KH):
        rows = (pl.ds(row0 + kh * dh, Ho_t) if sh == 1
                else pl.ds(row0 + kh * dh, Ho_t, sh))
        for kw in range(KW):
            cols = (pl.ds(kw * dw, Wo) if sw == 1
                    else pl.ds(kw * dw, Wo, sw))
            patch = x_ref[rows, cols, :]                          # (Ho_t, Wo, cin_g)
            lhs = patch.reshape(Ho_t * Wo, cin_g)
            contrib = jnp.dot(lhs, w_ref[kh * KW + kw],
                              preferred_element_type=jnp.float32)
            acc = contrib if acc is None else acc + contrib

    out = acc + b_ref[...]                                        # bias once, in f32
    o_ref[...] = out.reshape(Ho_t, Wo, cout_g).astype(o_ref.dtype)


def conv2d_pallas(x_nchw, weight_oihw, bias, *, stride=1, padding=None,
                  groups=1, dilation=1, compute_dtype=jnp.bfloat16, out_dtype=None):
    """Forward pass of torchdetection Conv2d (NCHW in, NCHW out).

    x_nchw:      (N, Cin, H, W)
    weight_oihw: (Cout, Cin // groups, KH, KW)   (PyTorch layout)
    bias:        (Cout,)
    """
    N, Cin, H, W = x_nchw.shape
    Cout, cin_g, KH, KW = weight_oihw.shape
    assert Cin == cin_g * groups and Cout % groups == 0
    cout_g = Cout // groups
    out_dtype = x_nchw.dtype if out_dtype is None else out_dtype

    sh, sw = _pair(stride)
    dh, dw = _pair(dilation)
    if padding is None:                         # autopad, per-dimension (handles KH != KW)
        ph = (dh * (KH - 1) + 1) // 2
        pw = (dw * (KW - 1) + 1) // 2
    else:
        ph, pw = _pair(padding)

    eff_kh = dh * (KH - 1) + 1
    eff_kw = dw * (KW - 1) + 1
    Ho = (H + 2 * ph - eff_kh) // sh + 1
    Wo = (W + 2 * pw - eff_kw) // sw + 1

    # Tile-shape quality: sublane-aligned Wo, row tile chosen under a register budget,
    # Ho padded to the tile grid (padded rows/cols are sliced off after the kernel).
    Wo_p = _round_up(Wo, 8)
    Ho_t = _pick_h_tile(Ho, Wo_p, cout_g)
    n_ht = pl.cdiv(Ho, Ho_t)
    Ho_p = n_ht * Ho_t

    # Input spatial extent needed to compute the padded output grid.
    Hp_need = (Ho_p - 1) * sh + eff_kh
    Wp_need = (Wo_p - 1) * sw + eff_kw
    pad_b = max(0, Hp_need - H - ph)
    pad_r = max(0, Wp_need - W - pw)
    Hp = H + ph + pad_b
    Wp = W + pw + pad_r

    # ---- wrapper glue: group-split NHWC layout + spatial zero padding (NO channel pad) ----
    x = x_nchw.reshape(N, groups, cin_g, H, W)
    x = jnp.transpose(x, (0, 1, 3, 4, 2))                         # (N, g, H, W, cin_g)
    x = jnp.pad(x, ((0, 0), (0, 0), (ph, pad_b), (pw, pad_r), (0, 0)))
    x = x.astype(compute_dtype)

    w = weight_oihw.reshape(groups, cout_g, cin_g, KH, KW)
    w = jnp.transpose(w, (0, 3, 4, 2, 1))                         # (g, KH, KW, cin_g, cout_g)
    w = w.reshape(groups, KH * KW, cin_g, cout_g).astype(compute_dtype)

    b = bias.astype(jnp.float32).reshape(groups, 1, cout_g)

    # ---- generation-aware VMEM budget (BlockSpec double-buffers each operand) ----
    cb = jnp.dtype(compute_dtype).itemsize
    ob = jnp.dtype(out_dtype).itemsize
    resident = (2 * Hp * Wp * cin_g * cb              # input slab (double buffered)
                + 2 * KH * KW * cin_g * cout_g * cb   # weights
                + 2 * cout_g * 4                      # bias
                + 2 * Ho_t * Wo_p * cout_g * ob       # output tile
                + Ho_t * Wo_p * cout_g * 4)           # f32 accumulator (vregs / spill)
    vmem_limit = _vmem_limit_bytes()
    if resident > int(0.9 * vmem_limit):
        # TODO(synk): halo-DMA input path for feature maps too large to keep resident.
        raise ValueError(
            f"conv2d_pallas: resident VMEM plan ({resident} B) exceeds the per-core "
            f"budget ({vmem_limit} B); needs the halo-DMA input path.")

    kernel = functools.partial(
        _conv2d_kernel, KH=KH, KW=KW, Ho_t=Ho_t, Wo=Wo_p,
        sh=sh, sw=sw, dh=dh, dw=dw, cin_g=cin_g, cout_g=cout_g)

    out_pad = pl.pallas_call(
        kernel,
        out_shape=jax.ShapeDtypeStruct((N, groups, Ho_p, Wo_p, cout_g), out_dtype),
        grid_spec=pltpu.PrefetchScalarGridSpec(
            num_scalar_prefetch=0,
            grid=(N, groups, n_ht),
            in_specs=[
                # Input slab stays resident across the (fastest) row-tile axis.
                pl.BlockSpec((None, None, Hp, Wp, cin_g),
                             lambda n, g, h: (n, g, 0, 0, 0)),
                pl.BlockSpec((None, KH * KW, cin_g, cout_g),
                             lambda n, g, h: (g, 0, 0, 0)),
                pl.BlockSpec((None, 1, cout_g),
                             lambda n, g, h: (g, 0, 0)),
            ],
            out_specs=pl.BlockSpec((None, None, Ho_t, Wo_p, cout_g),
                                   lambda n, g, h: (n, g, h, 0, 0)),
        ),
        compiler_params=pltpu.CompilerParams(
            dimension_semantics=("parallel", "parallel", "parallel"),
            vmem_limit_bytes=vmem_limit),
    )(x, w, b)

    # Strip spatial padding; back to NCHW (group-major channels) to match nn.Conv2d.
    out = out_pad[:, :, :Ho, :Wo, :]
    out = jnp.transpose(out, (0, 1, 4, 2, 3)).reshape(N, Cout, Ho, Wo)
    return out


if __name__ == "__main__":
    # Module config: Conv2d(in_channels=4, out_channels=8, kernel_size=3)
    in_channels, out_channels, kernel_size = 4, 8, 3
    stride, groups, dilation = 1, 1, 1
    N, H, W = 2, 16, 16

    key = jax.random.PRNGKey(0)
    kx, kw_key, kb = jax.random.split(key, 3)
    x = jax.random.normal(kx, (N, in_channels, H, W), dtype=jnp.float32)
    weight = jax.random.normal(
        kw_key, (out_channels, in_channels // groups, kernel_size, kernel_size),
        dtype=jnp.float32) * 0.1
    bias = jax.random.normal(kb, (out_channels,), dtype=jnp.float32) * 0.1

    conv = jax.jit(functools.partial(
        conv2d_pallas, stride=stride, padding=None, groups=groups,
        dilation=dilation, compute_dtype=jnp.bfloat16))
    out = jax.block_until_ready(conv(x, weight, bias))

    pad = autopad(kernel_size, None, dilation)

    def ref_conv(xx, ww):
        return jax.lax.conv_general_dilated(
            xx, ww, window_strides=(stride, stride),
            padding=((pad, pad), (pad, pad)),
            rhs_dilation=(dilation, dilation),
            dimension_numbers=("NCHW", "OIHW", "NCHW"),
            feature_group_count=groups,
            precision=jax.lax.Precision.HIGHEST,
        ) + bias[None, :, None, None]

    assert out.shape == (N, out_channels, H, W)

    # Tight check: f32 reference on the same bf16-quantized operands the MXU path uses.
    ref_q = ref_conv(x.astype(jnp.bfloat16).astype(jnp.float32),
                     weight.astype(jnp.bfloat16).astype(jnp.float32))
    assert jnp.allclose(out, ref_q, atol=2e-4, rtol=2e-4), \
        float(jnp.max(jnp.abs(out - ref_q)))

    # Loose check against the true f32 nn.Conv2d semantics (bf16 rounding tolerance).
    ref_f32 = ref_conv(x, weight)
    assert jnp.allclose(out, ref_f32, atol=5e-2, rtol=5e-2), \
        float(jnp.max(jnp.abs(out - ref_f32)))

    print("KERNEL_OK")
</pallas_src>

<mosaic_0001>
module attributes {stable_mosaic.version = 11 : i64} {
  func.func @_conv2d_kernel(%arg0: i32, %arg1: i32, %arg2: i32, %arg3: memref<1x1x18x18x4xbf16, #tpu.memory_space<vmem>>, %arg4: memref<1x9x4x8xbf16, #tpu.memory_space<vmem>>, %arg5: memref<1x1x8xf32, #tpu.memory_space<vmem>>, %arg6: memref<1x1x16x16x8xf32, #tpu.memory_space<vmem>>) attributes {dimension_semantics = [#tpu.dimension_semantics<parallel>, #tpu.dimension_semantics<parallel>, #tpu.dimension_semantics<parallel>], iteration_bounds = array<i64: 2, 1, 1>, scalar_prefetch = 0 : i64, scratch_operands = 0 : i64, tpu.core_type = #tpu.core_type<tc>, window_params = [{transform_indices = @transform_0, window_bounds = array<i64: 1, 1, 18, 18, 4>}, {transform_indices = @transform_1, window_bounds = array<i64: 1, 9, 4, 8>}, {transform_indices = @transform_2, window_bounds = array<i64: 1, 1, 8>}, {transform_indices = @transform_3, window_bounds = array<i64: 1, 1, 16, 16, 8>}]} {
    %c16_i32 = arith.constant 16 : i32
    %0 = arith.muli %arg2, %c16_i32 : i32
    %1 = tpu.assume_multiple %0, 16 : i32
    %c0_i32 = arith.constant 0 : i32
    %2 = arith.addi %1, %c0_i32 : i32
    %c0 = arith.constant 0 : index
    %c0_0 = arith.constant 0 : index
    %3 = arith.index_cast %2 : i32 to index
    %c0_1 = arith.constant 0 : index
    %c0_2 = arith.constant 0 : index
    %4 = vector.load %arg3[%c0, %c0_0, %3, %c0_1, %c0_2] : memref<1x1x18x18x4xbf16, #tpu.memory_space<vmem>>, vector<1x1x16x16x4xbf16>
    %5 = vector.shape_cast %4 : vector<1x1x16x16x4xbf16> to vector<16x16x4xbf16>
    %6 = vector.shape_cast %5 : vector<16x16x4xbf16> to vector<256x4xbf16>
    %c0_3 = arith.constant 0 : index
    %c0_4 = arith.constant 0 : index
    %c0_5 = arith.constant 0 : index
    %c0_6 = arith.constant 0 : index
    %7 = vector.load %arg4[%c0_3, %c0_4, %c0_5, %c0_6] : memref<1x9x4x8xbf16, #tpu.memory_space<vmem>>, vector<1x1x4x8xbf16>
    %8 = vector.shape_cast %7 : vector<1x1x4x8xbf16> to vector<4x8xbf16>
    %cst = arith.constant dense<0.000000e+00> : vector<256x8xf32>
    %9 = tpu.matmul %6, %8, %cst {dimension_numbers = #tpu.dot_dimension_numbers<[1], [0], [0], [1], [0, 0, 1, 1], [], []>} : vector<256x4xbf16>, vector<4x8xbf16>, vector<256x8xf32> -> vector<256x8xf32>
    %c0_7 = arith.constant 0 : index
    %c0_8 = arith.constant 0 : index
    %10 = arith.index_cast %2 : i32 to index
    %c1 = arith.constant 1 : index
    %c0_9 = arith.constant 0 : index
    %11 = vector.load %arg3[%c0_7, %c0_8, %10, %c1, %c0_9] : memref<1x1x18x18x4xbf16, #tpu.memory_space<vmem>>, vector<1x1x16x16x4xbf16>
    %12 = vector.shape_cast %11 : vector<1x1x16x16x4xbf16> to vector<16x16x4xbf16>
    %13 = vector.shape_cast %12 : vector<16x16x4xbf16> to vector<256x4xbf16>
    %c0_10 = arith.constant 0 : index
    %c1_11 = arith.constant 1 : index
    %c0_12 = arith.constant 0 : index
    %c0_13 = arith.constant 0 : index
    %14 = vector.load %arg4[%c0_10, %c1_11, %c0_12, %c0_13] : memref<1x9x4x8xbf16, #tpu.memory_space<vmem>>, vector<1x1x4x8xbf16>
    %15 = vector.shape_cast %14 : vector<1x1x4x8xbf16> to vector<4x8xbf16>
    %cst_14 = arith.constant dense<0.000000e+00> : vector<256x8xf32>
    %16 = tpu.matmul %13, %15, %cst_14 {dimension_numbers = #tpu.dot_dimension_numbers<[1], [0], [0], [1], [0, 0, 1, 1], [], []>} : vector<256x4xbf16>, vector<4x8xbf16>, vector<256x8xf32> -> vector<256x8xf32>
    %17 = arith.addf %9, %16 : vector<256x8xf32>
    %c0_15 = arith.constant 0 : index
    %c0_16 = arith.constant 0 : index
    %18 = arith.index_cast %2 : i32 to index
    %c2 = arith.constant 2 : index
    %c0_17 = arith.constant 0 : index
    %19 = vector.load %arg3[%c0_15, %c0_16, %18, %c2, %c0_17] : memref<1x1x18x18x4xbf16, #tpu.memory_space<vmem>>, vector<1x1x16x16x4xbf16>
    %20 = vector.shape_cast %19 : vector<1x1x16x16x4xbf16> to vector<16x16x4xbf16>
    %21 = vector.shape_cast %20 : vector<16x16x4xbf16> to vector<256x4xbf16>
    %c0_18 = arith.constant 0 : index
    %c2_19 = arith.constant 2 : index
    %c0_20 = arith.constant 0 : index
    %c0_21 = arith.constant 0 : index
    %22 = vector.load %arg4[%c0_18, %c2_19, %c0_20, %c0_21] : memref<1x9x4x8xbf16, #tpu.memory_space<vmem>>, vector<1x1x4x8xbf16>
    %23 = vector.shape_cast %22 : vector<1x1x4x8xbf16> to vector<4x8xbf16>
    %cst_22 = arith.constant dense<0.000000e+00> : vector<256x8xf32>
    %24 = tpu.matmul %21, %23, %cst_22 {dimension_numbers = #tpu.dot_dimension_numbers<[1], [0], [0], [1], [0, 0, 1, 1], [], []>} : vector<256x4xbf16>, vector<4x8xbf16>, vector<256x8xf32> -> vector<256x8xf32>
    %25 = arith.addf %17, %24 : vector<256x8xf32>
    %c1_i32 = arith.constant 1 : i32
    %26 = arith.addi %1, %c1_i32 : i32
    %c0_23 = arith.constant 0 : index
    %c0_24 = arith.constant 0 : index
    %27 = arith.index_cast %26 : i32 to index
    %c0_25 = arith.constant 0 : index
    %c0_26 = arith.constant 0 : index
    %28 = vector.load %arg3[%c0_23, %c0_24, %27, %c0_25, %c0_26] : memref<1x1x18x18x4xbf16, #tpu.memory_space<vmem>>, vector<1x1x16x16x4xbf16>
    %29 = vector.shape_cast %28 : vector<1x1x16x16x4xbf16> to vector<16x16x4xbf16>
    %30 = vector.shape_cast %29 : vector<16x16x4xbf16> to vector<256x4xbf16>
    %c0_27 = arith.constant 0 : index
    %c3 = arith.constant 3 : index
    %c0_28 = arith.constant 0 : index
    %c0_29 = arith.constant 0 : index
    %31 = vector.load %arg4[%c0_27, %c3, %c0_28, %c0_29] : memref<1x9x4x8xbf16, #tpu.memory_space<vmem>>, vector<1x1x4x8xbf16>
    %32 = vector.shape_cast %31 : vector<1x1x4x8xbf16> to vector<4x8xbf16>
    %cst_30 = arith.constant dense<0.000000e+00> : vector<256x8xf32>
    %33 = tpu.matmul %30, %32, %cst_30 {dimension_numbers = #tpu.dot_dimension_numbers<[1], [0], [0], [1], [0, 0, 1, 1], [], []>} : vector<256x4xbf16>, vector<4x8xbf16>, vector<256x8xf32> -> vector<256x8xf32>
    %34 = arith.addf %25, %33 : vector<256x8xf32>
    %c0_31 = arith.constant 0 : index
    %c0_32 = arith.constant 0 : index
    %35 = arith.index_cast %26 : i32 to index
    %c1_33 = arith.constant 1 : index
    %c0_34 = arith.constant 0 : index
    %36 = vector.load %arg3[%c0_31, %c0_32, %35, %c1_33, %c0_34] : memref<1x1x18x18x4xbf16, #tpu.memory_space<vmem>>, vector<1x1x16x16x4xbf16>
    %37 = vector.shape_cast %36 : vector<1x1x16x16x4xbf16> to vector<16x16x4xbf16>
    %38 = vector.shape_cast %37 : vector<16x16x4xbf16> to vector<256x4xbf16>
    %c0_35 = arith.constant 0 : index
    %c4 = arith.constant 4 : index
    %c0_36 = arith.constant 0 : index
    %c0_37 = arith.constant 0 : index
    %39 = vector.load %arg4[%c0_35, %c4, %c0_36, %c0_37] : memref<1x9x4x8xbf16, #tpu.memory_space<vmem>>, vector<1x1x4x8xbf16>
    %40 = vector.shape_cast %39 : vector<1x1x4x8xbf16> to vector<4x8xbf16>
    %cst_38 = arith.constant dense<0.000000e+00> : vector<256x8xf32>
    %41 = tpu.matmul %38, %40, %cst_38 {dimension_numbers = #tpu.dot_dimension_numbers<[1], [0], [0], [1], [0, 0, 1, 1], [], []>} : vector<256x4xbf16>, vector<4x8xbf16>, vector<256x8xf32> -> vector<256x8xf32>
    %42 = arith.addf %34, %41 : vector<256x8xf32>
    %c0_39 = arith.constant 0 : index
    %c0_40 = arith.constant 0 : index
    %43 = arith.index_cast %26 : i32 to index
    %c2_41 = arith.constant 2 : index
    %c0_42 = arith.constant 0 : index
    %44 = vector.load %arg3[%c0_39, %c0_40, %43, %c2_41, %c0_42] : memref<1x1x18x18x4xbf16, #tpu.memory_space<vmem>>, vector<1x1x16x16x4xbf16>
    %45 = vector.shape_cast %44 : vector<1x1x16x16x4xbf16> to vector<16x16x4xbf16>
    %46 = vector.shape_cast %45 : vector<16x16x4xbf16> to vector<256x4xbf16>
    %c0_43 = arith.constant 0 : index
    %c5 = arith.constant 5 : index
    %c0_44 = arith.constant 0 : index
    %c0_45 = arith.constant 0 : index
    %47 = vector.load %arg4[%c0_43, %c5, %c0_44, %c0_45] : memref<1x9x4x8xbf16, #tpu.memory_space<vmem>>, vector<1x1x4x8xbf16>
    %48 = vector.shape_cast %47 : vector<1x1x4x8xbf16> to vector<4x8xbf16>
    %cst_46 = arith.constant dense<0.000000e+00> : vector<256x8xf32>
    %49 = tpu.matmul %46, %48, %cst_46 {dimension_numbers = #tpu.dot_dimension_numbers<[1], [0], [0], [1], [0, 0, 1, 1], [], []>} : vector<256x4xbf16>, vector<4x8xbf16>, vector<256x8xf32> -> vector<256x8xf32>
    %50 = arith.addf %42, %49 : vector<256x8xf32>
    %c2_i32 = arith.constant 2 : i32
    %51 = arith.addi %1, %c2_i32 : i32
    %c0_47 = arith.constant 0 : index
    %c0_48 = arith.constant 0 : index
    %52 = arith.index_cast %51 : i32 to index
    %c0_49 = arith.constant 0 : index
    %c0_50 = arith.constant 0 : index
    %53 = vector.load %arg3[%c0_47, %c0_48, %52, %c0_49, %c0_50] : memref<1x1x18x18x4xbf16, #tpu.memory_space<vmem>>, vector<1x1x16x16x4xbf16>
    %54 = vector.shape_cast %53 : vector<1x1x16x16x4xbf16> to vector<16x16x4xbf16>
    %55 = vector.shape_cast %54 : vector<16x16x4xbf16> to vector<256x4xbf16>
    %c0_51 = arith.constant 0 : index
    %c6 = arith.constant 6 : index
    %c0_52 = arith.constant 0 : index
    %c0_53 = arith.constant 0 : index
    %56 = vector.load %arg4[%c0_51, %c6, %c0_52, %c0_53] : memref<1x9x4x8xbf16, #tpu.memory_space<vmem>>, vector<1x1x4x8xbf16>
    %57 = vector.shape_cast %56 : vector<1x1x4x8xbf16> to vector<4x8xbf16>
    %cst_54 = arith.constant dense<0.000000e+00> : vector<256x8xf32>
    %58 = tpu.matmul %55, %57, %cst_54 {dimension_numbers = #tpu.dot_dimension_numbers<[1], [0], [0], [1], [0, 0, 1, 1], [], []>} : vector<256x4xbf16>, vector<4x8xbf16>, vector<256x8xf32> -> vector<256x8xf32>
    %59 = arith.addf %50, %58 : vector<256x8xf32>
    %c0_55 = arith.constant 0 : index
    %c0_56 = arith.constant 0 : index
    %60 = arith.index_cast %51 : i32 to index
    %c1_57 = arith.constant 1 : index
    %c0_58 = arith.constant 0 : index
    %61 = vector.load %arg3[%c0_55, %c0_56, %60, %c1_57, %c0_58] : memref<1x1x18x18x4xbf16, #tpu.memory_space<vmem>>, vector<1x1x16x16x4xbf16>
    %62 = vector.shape_cast %61 : vector<1x1x16x16x4xbf16> to vector<16x16x4xbf16>
    %63 = vector.shape_cast %62 : vector<16x16x4xbf16> to vector<256x4xbf16>
    %c0_59 = arith.constant 0 : index
    %c7 = arith.constant 7 : index
    %c0_60 = arith.constant 0 : index
    %c0_61 = arith.constant 0 : index
    %64 = vector.load %arg4[%c0_59, %c7, %c0_60, %c0_61] : memref<1x9x4x8xbf16, #tpu.memory_space<vmem>>, vector<1x1x4x8xbf16>
    %65 = vector.shape_cast %64 : vector<1x1x4x8xbf16> to vector<4x8xbf16>
    %cst_62 = arith.constant dense<0.000000e+00> : vector<256x8xf32>
    %66 = tpu.matmul %63, %65, %cst_62 {dimension_numbers = #tpu.dot_dimension_numbers<[1], [0], [0], [1], [0, 0, 1, 1], [], []>} : vector<256x4xbf16>, vector<4x8xbf16>, vector<256x8xf32> -> vector<256x8xf32>
    %67 = arith.addf %59, %66 : vector<256x8xf32>
    %c0_63 = arith.constant 0 : index
    %c0_64 = arith.constant 0 : index
    %68 = arith.index_cast %51 : i32 to index
    %c2_65 = arith.constant 2 : index
    %c0_66 = arith.constant 0 : index
    %69 = vector.load %arg3[%c0_63, %c0_64, %68, %c2_65, %c0_66] : memref<1x1x18x18x4xbf16, #tpu.memory_space<vmem>>, vector<1x1x16x16x4xbf16>
    %70 = vector.shape_cast %69 : vector<1x1x16x16x4xbf16> to vector<16x16x4xbf16>
    %71 = vector.shape_cast %70 : vector<16x16x4xbf16> to vector<256x4xbf16>
    %c0_67 = arith.constant 0 : index
    %c8 = arith.constant 8 : index
    %c0_68 = arith.constant 0 : index
    %c0_69 = arith.constant 0 : index
    %72 = vector.load %arg4[%c0_67, %c8, %c0_68, %c0_69] : memref<1x9x4x8xbf16, #tpu.memory_space<vmem>>, vector<1x1x4x8xbf16>
    %73 = vector.shape_cast %72 : vector<1x1x4x8xbf16> to vector<4x8xbf16>
    %cst_70 = arith.constant dense<0.000000e+00> : vector<256x8xf32>
    %74 = tpu.matmul %71, %73, %cst_70 {dimension_numbers = #tpu.dot_dimension_numbers<[1], [0], [0], [1], [0, 0, 1, 1], [], []>} : vector<256x4xbf16>, vector<4x8xbf16>, vector<256x8xf32> -> vector<256x8xf32>
    %75 = arith.addf %67, %74 : vector<256x8xf32>
    %c0_71 = arith.constant 0 : index
    %c0_72 = arith.constant 0 : index
    %c0_73 = arith.constant 0 : index
    %76 = vector.load %arg5[%c0_71, %c0_72, %c0_73] : memref<1x1x8xf32, #tpu.memory_space<vmem>>, vector<1x1x8xf32>
    %77 = vector.shape_cast %76 : vector<1x1x8xf32> to vector<1x8xf32>
    %78 = vector.broadcast %77 : vector<1x8xf32> to vector<256x8xf32>
    %79 = arith.addf %75, %78 : vector<256x8xf32>
    %80 = vector.shape_cast %79 : vector<256x8xf32> to vector<16x16x8xf32>
    %c0_74 = arith.constant 0 : index
    %c0_75 = arith.constant 0 : index
    %c0_76 = arith.constant 0 : index
    %c0_77 = arith.constant 0 : index
    %c0_78 = arith.constant 0 : index
    %81 = vector.load %arg6[%c0_74, %c0_75, %c0_76, %c0_77, %c0_78] : memref<1x1x16x16x8xf32, #tpu.memory_space<vmem>>, vector<1x1x16x16x8xf32>
    %82 = vector.shape_cast %81 : vector<1x1x16x16x8xf32> to vector<16x16x8xf32>
    %83 = vector.shape_cast %80 : vector<16x16x8xf32> to vector<1x1x16x16x8xf32>
    tpu.vector_store %arg6[%c0_74, %c0_75, %c0_76, %c0_77, %c0_78], %83 {strides = array<i32>} : memref<1x1x16x16x8xf32, #tpu.memory_space<vmem>>, vector<1x1x16x16x8xf32>,
    return
  }
  func.func @transform_0(%arg0: i32, %arg1: i32, %arg2: i32) -> (i32, i32, i32, i32, i32) {
    %c0_i32 = arith.constant 0 : i32
    %c0_i32_0 = arith.constant 0 : i32
    %c0_i32_1 = arith.constant 0 : i32
    %c0_i32_2 = arith.constant 0 : i32
    return %arg0, %arg1, %c0_i32, %c0_i32_0, %c0_i32_1 : i32, i32, i32, i32, i32
  }
  func.func @transform_1(%arg0: i32, %arg1: i32, %arg2: i32) -> (i32, i32, i32, i32) {
    %c0_i32 = arith.constant 0 : i32
    %c0_i32_0 = arith.constant 0 : i32
    %c0_i32_1 = arith.constant 0 : i32
    %c0_i32_2 = arith.constant 0 : i32
    return %arg1, %c0_i32, %c0_i32_0, %c0_i32_1 : i32, i32, i32, i32
  }
  func.func @transform_2(%arg0: i32, %arg1: i32, %arg2: i32) -> (i32, i32, i32) {
    %c0_i32 = arith.constant 0 : i32
    %c0_i32_0 = arith.constant 0 : i32
    %c0_i32_1 = arith.constant 0 : i32
    return %arg1, %c0_i32, %c0_i32_0 : i32, i32, i32
  }
  func.func @transform_3(%arg0: i32, %arg1: i32, %arg2: i32) -> (i32, i32, i32, i32, i32) {
    %c0_i32 = arith.constant 0 : i32
    %c0_i32_0 = arith.constant 0 : i32
    %c0_i32_1 = arith.constant 0 : i32
    return %arg0, %arg1, %arg2, %c0_i32, %c0_i32_0 : i32, i32, i32, i32, i32
  }
}

</mosaic_0001>

<bundles_post_ra>
// kernel: conv2d_pallas.1
= control target key start
LH: loop header
LB: loop body
LE: loop exit
PB: predicated region body
PF: predicated region fallthrough
CT: control target
= control target key end

     0   :  { %s6506_s12 = smov 0   ;;  %s6508_s13 = smov 0   ;;  %s8343_s0 = inlined_call_operand.vmem [shape: bf16[2,1,18,18,4], index: 0, kind: input, shape index: {}]   ;;  %s8344_s1 = inlined_call_operand.vmem [shape: bf16[1,9,4,8], index: 1, kind: input, shape index: {}]   ;;  %s8345_s2 = inlined_call_operand.vmem [shape: f32[1,1,8], index: 2, kind: input, shape index: {}]   ;;  %s8346_s3 = inlined_call_operand.vmem [shape: f32[2,1,16,16,8], index: 3, kind: output, shape index: {}]  }
   0x1   :  { %s6510_s14 = smov 0  }
   0x2 LB: > { %s32_s15 = sadd.s32 1, %s6480_s13  ;;  %p5061_p0 = scmp.ge.s32.totalorder %s6484_s14, 1  ;;  %s6484_s14 = sphi %s6510_s14, %s13_s14   ;;  %s6480_s13 = sphi %s6508_s13, %s8415_s13   ;;  %s6476_s12 = sphi %s6506_s12, %s8414_s12  }
   0x3   : > { %p34_p1 = scmp.ge.s32.totalorder %s32_s15, 2  ;;  %p184_p2 = scmp.lt.s32.totalorder %s6484_s14, 3 }
   0x5   : > { %s8417_s15 = smov (%p34_p1, %s32_s15), 0  ;;  %p185_p3 = pnand %p5061_p0, %p184_p2 }
   0x7   : > { %188 = sbr.rel (%p185_p3) target bundleno = 586 (0x24a), region = 32 }
   0xe   : > { %v5065_v0 = vld [vmem:[%s8344_s1 + $0x2] sm:$0x3]  ;;  %vm801_vm0 = vcmask 1041408   ;;  %v5292_v1 = vld [vmem:[%s8344_s1 + $0x8] sm:$0x3]  ;;  %p229_p4 = scmp.lt.s32.totalorder %s6476_s12, 1 }
   0xf   : > { %6322 = vmatprep.subr.msk.bf16.mxu1 %vm801_vm0, %v5065_v0  ;;  %6326 = vmatprep.subr.msk.bf16.mxu0 %vm801_vm0, %v5292_v1  ;;  %v803_v2 = vsel %vm801_vm0, %v5065_v0, 0  ;;  %v6534_v3 = vsel %vm801_vm0, %v5292_v1, 0  ;;  %v298_v4 = vld [vmem:[%s8344_s1] sm:$0x3]  ;;  %v5357_v5 = vld [vmem:[%s8344_s1 + $0xa] sm:$0x3] }
  0x10   : > { %8360 = vst [vmem:[#allocation2_spill] sm:$0xff] %v6534_v3  ;;  %5759 = vmatpush3.bf16.msra.mxu1 %v803_v2  ;;  %5895 = vmatpush3.bf16.msra.mxu0 %v6534_v3  ;;  %s8419_s12 = smov (!%p229_p4, %s6476_s12), 1  ;;  %vm315_vm1 = vsmask.f32 3328  ;;  %vm316_vm2 = vsmask.f32 7440 }
  0x11   : > { %6323 = vmatprep.subr.msk.bf16.mxu1 %vm801_vm0, %v298_v4  ;;  %6328 = vmatprep.subr.msk.bf16.mxu0 %vm801_vm0, %v5357_v5  ;;  %s6332_s24 = smul.u32 216, %s8419_s12  ;;  %vm752_vm3 = vcmask 31744   ;;  %v6564_v17 = vsel %vm801_vm0, %v298_v4, 0  ;;  %v6570_v26 = vld [vmem:[%s8344_s1 + $0xc] sm:$0x3]  ;;  %vm6577_vm4 = vmor %vm315_vm1, %vm316_vm2  ;;  %v6583_v37 = vsel %vm801_vm0, %v5357_v5, 0 }
  0x12   : > { %v6587_v41 = vsel %vm801_vm0, %v6570_v26, 0  ;;  %vm1306_vm5 = vcmask 1042432   ;;  %vm1307_vm6 = vcmask 1046532   ;;  %s5604_s19 = sshll.u32 %s8419_s12, 8  ;;  %vm4870_vm8 = vcmask 64512  }
  0x13   : > { %s6551_s27 = scalar_lea.vmem %s8343_s0, %s6332_s24  ;;  %vm6803_vm7 = vmor %vm1306_vm5, %vm1307_vm6  ;;  %s8236_s24 = scalar_lea.vmem %s8346_s3, %s5604_s19 }
  0x14   : > { %v266_v6 = vld [vmem:[%s6551_s27] sm:$0xf]  ;;  %v267_v7 = vld [vmem:[%s6551_s27 + $0x4] sm:$0xf]  ;;  %v299_v8 = vld [vmem:[%s6551_s27 + $0x8] sm:$0x1] }
  0x15   : > { %v319_v9 = vshrl.u32 %v266_v6, 16  ;;  %v322_v10 = vshll.u32 %v266_v6, 16  ;;  %v328_v11 = vshll.u32 %v267_v7, 16  ;;  %v332_v12 = vshrl.u32 %v267_v7, 16  ;;  %v5244_v13 = vld [vmem:[%s6551_s27 + $0xc] sm:$0xf] }
  0x16   : > { %v338_v14 = vshll.u32 %v299_v8, 16  ;;  %v6558_v15 = vld [vmem:[%s6551_s27 + $0x10] sm:$0xf]  ;;  %v6561_v16 = vld [vmem:[%s6551_s27 + $0x14] sm:$0x1]  ;;  %v2126_v23 = vshrl.u32 %v5244_v13, 16 }
  0x17   : > { %v321_v18 = vrot.slane %v319_v9, 4  ;;  %v324_v19 = vrot.slane %v322_v10, 5  ;;  %v330_v20 = vrot.slane %v328_v11, 5  ;;  %v334_v21 = vrot.slane %v332_v12, 4  ;;  %v268_v31 = vld [vmem:[%s6551_s27 + $0xc] sm:$0xf] }
  0x18   : > { %v340_v22 = vrot.slane %v338_v14, 5  ;;  %v2129_v24 = vshll.u32 %v5244_v13, 16  ;;  %v2135_v25 = vshll.u32 %v6558_v15, 16  ;;  %v2139_v29 = vshrl.u32 %v6558_v15, 16  ;;  %v269_v36 = vld [vmem:[%s6551_s27 + $0x10] sm:$0xf] }
  0x19   : > { %v325_v27 = vor.u32 %v324_v19, %v321_v18  ;;  %v335_v28 = vor.u32 %v334_v21, %v330_v20  ;;  %v2145_v30 = vshll.u32 %v6561_v16, 16  ;;  %v2128_v33 = vrot.slane %v2126_v23, 4  ;;  %v300_v44 = vld [vmem:[%s6551_s27 + $0x14] sm:$0x1]  ;;  %v5247_v55 = vld [vmem:[%s6551_s27 + $0x18] sm:$0xf] }
  0x1a   : > { %v2131_v34 = vrot.slane %v2129_v24, 5  ;;  %v2137_v35 = vrot.slane %v2135_v25, 5  ;;  %v2141_v40 = vrot.slane %v2139_v29, 4  ;;  %v343_v45 = vshrl.u32 %v268_v31, 16  ;;  %v6596_v60 = vld [vmem:[%s6551_s27 + $0x1c] sm:$0xf] }
  0x1b   : > { %v326_v38 = vrot.slane %v325_v27, 4  ;;  %v336_v39 = vrot.slane %v335_v28, 4  ;;  %v2147_v43 = vrot.slane %v2145_v30, 5  ;;  %v346_v46 = vshll.u32 %v268_v31, 16  ;;  %v6604_v1 = vld [vmem:[%s6551_s27 + $0x20] sm:$0x1] }
  0x1c   : > { %v2132_v42 = vor.u32 %v2131_v34, %v2128_v33  ;;  %v2142_v49 = vor.u32 %v2141_v40, %v2137_v35  ;;  %v352_v50 = vshll.u32 %v269_v36, 16  ;;  %v345_v53 = vrot.slane %v343_v45, 4  ;;  %v270_v18 = vld [vmem:[%s6551_s27 + $0x18] sm:$0xf]  ;;  %v271_v23 = vld [vmem:[%s6551_s27 + $0x1c] sm:$0xf] }
  0x1d   : > { %v331_v47 = vsel %vm6577_vm4, %v326_v38, %v330_v20  ;;  %v341_v48 = vsel %vm6577_vm4, %v336_v39, %v340_v22  ;;  %v348_v54 = vrot.slane %v346_v46, 5  ;;  %v356_v58 = vshrl.u32 %v269_v36, 16  ;;  %v301_v31 = vld [vmem:[%s6551_s27 + $0x20] sm:$0x1]  ;;  %v5250_v40 = vld [vmem:[%s6551_s27 + $0x24] sm:$0xf] }
  0x1e   : > { %v5066_v51 = vcombine.low %v331_v47, %v341_v48  ;;  %v2133_v52 = vrot.slane %v2132_v42, 4  ;;  %v2143_v56 = vrot.slane %v2142_v49, 4  ;;  %v354_v57 = vrot.slane %v352_v50, 5  ;;  %v6627_v46 = vld [vmem:[%s6551_s27 + $0x28] sm:$0xf] }
  0x1f   : > { %v362_v59 = vshll.u32 %v300_v44, 16  ;;  %v2869_v62 = vrot.slane %v6558_v15, 5  ;;  %v2872_v63 = vrot.slane %v6561_v16, 5  ;;  %v349_v0 = vor.u32 %v348_v54, %v345_v53  ;;  %v6636_v54 = vld [vmem:[%s6551_s27 + $0x2c] sm:$0x1] }
  0x20   : > { %5760 = vmatprep.mubr.msk.bf16.mxu1 %vm752_vm3, %v5066_v51  ;;  %v2138_v61 = vsel %vm6577_vm4, %v2133_v52, %v2137_v35  ;;  %v2148_v2 = vsel %vm6577_vm4, %v2143_v56, %v2147_v43  ;;  %v358_v4 = vrot.slane %v356_v58, 4  ;;  %v2150_v6 = vshrl.u32 %v5247_v55, 16  ;;  %v5146_v51 = vld [vmem:[%s8344_s1 + $0x4] sm:$0x3]  ;;  %v6836_v16 = vld [vmem:[%s6551_s27 + $0x7c] sm:$0xf] }
  0x21   : > { %v364_v5 = vrot.slane %v362_v59, 5  ;;  %v5293_v7 = vcombine.low %v2138_v61, %v2148_v2  ;;  %v350_v8 = vrot.slane %v349_v0, 4  ;;  %v2153_v9 = vshll.u32 %v5247_v55, 16  ;;  %v272_v0 = vld [vmem:[%s6551_s27 + $0x24] sm:$0xf] }
  0x22   : > { %v2159_v10 = vshll.u32 %v6596_v60, 16  ;;  %v359_v11 = vor.u32 %v358_v4, %v354_v57  ;;  %v2152_v12 = vrot.slane %v2150_v6, 4  ;;  %v2163_v13 = vshrl.u32 %v6596_v60, 16 }
  0x23   : > { %v2169_v14 = vshll.u32 %v6604_v1, 16  ;;  %5896 = vmatprep.mubr.msk.bf16.mxu0 %vm752_vm3, %v5293_v7  ;;  %v355_v19 = vsel %vm6577_vm4, %v350_v8, %v354_v57  ;;  %v2155_v20 = vrot.slane %v2153_v9, 5  ;;  %v2876_v22 = vrot.slane %v6596_v60, 5  ;;  %v273_v7 = vld [vmem:[%s6551_s27 + $0x28] sm:$0xf] }
  0x24   : > { %v2161_v21 = vrot.slane %v2159_v10, 5  ;;  %v360_v24 = vrot.slane %v359_v11, 4  ;;  %v2165_v25 = vrot.slane %v2163_v13, 4  ;;  %v2879_v28 = vrot.slane %v6604_v1, 5  ;;  %v302_v13 = vld [vmem:[%s6551_s27 + $0x2c] sm:$0x1] }
  0x25   : > { %v2171_v27 = vrot.slane %v2169_v14, 5  ;;  %v2156_v29 = vor.u32 %v2155_v20, %v2152_v12  ;;  %v6620_v30 = vrot.slane %v2876_v22, 4  ;;  %v367_v33 = vshrl.u32 %v270_v18, 16 }
  0x26   : > { %v370_v34 = vshll.u32 %v270_v18, 16  ;;  %v365_v35 = vsel %vm6577_vm4, %v360_v24, %v364_v5  ;;  %v2166_v36 = vor.u32 %v2165_v25, %v2161_v21  ;;  %v376_v38 = vshll.u32 %v271_v23, 16  ;;  %v5253_v24 = vld [vmem:[%s6551_s27 + $0x30] sm:$0xf] }
  0x27   : > { %v380_v39 = vshrl.u32 %v271_v23, 16  ;;  %v5067_v42 = vcombine.low %v355_v19, %v365_v35  ;;  %v2157_v43 = vrot.slane %v2156_v29, 4  ;;  %v369_v44 = vrot.slane %v367_v33, 4  ;;  %v6656_v33 = vld [vmem:[%s6551_s27 + $0x34] sm:$0xf] }
  0x28   : > { %v372_v45 = vrot.slane %v370_v34, 5  ;;  %v2167_v47 = vrot.slane %v2166_v36, 4  ;;  %v378_v48 = vrot.slane %v376_v38, 5  ;;  %v386_v50 = vshll.u32 %v301_v31, 16 }
  0x29   : > { %v382_v49 = vrot.slane %v380_v39, 4  ;;  %5761 = vmatmul.mubr.msk.bf16.vlgmr.msra.gmra.mrb[0].mxu1 %vm752_vm3, %v5067_v42  ;;  %v2162_v52 = vsel %vm6577_vm4, %v2157_v43, %v2161_v21  ;;  %v2174_v55 = vshrl.u32 %v5250_v40, 16  ;;  %v2177_v56 = vshll.u32 %v5250_v40, 16  ;;  %v6664_v40 = vld [vmem:[%s6551_s27 + $0x38] sm:$0x1] }
  0x2a   : > { %v373_v53 = vor.u32 %v372_v45, %v369_v44  ;;  %5793 = vmatpush3.bf16.msra.mxu1 %v6564_v17  ;;  %v2172_v57 = vsel %vm6577_vm4, %v2167_v47, %v2171_v27  ;;  %v388_v59 = vrot.slane %v386_v50, 5  ;;  %v2183_v61 = vshll.u32 %v6627_v46, 16 }
  0x2b   : > { %v383_v58 = vor.u32 %v382_v49, %v378_v48  ;;  %v5294_v2 = vcombine.low %v2162_v52, %v2172_v57  ;;  %v2176_v5 = vrot.slane %v2174_v55, 4  ;;  %v2179_v6 = vrot.slane %v2177_v56, 5  ;;  %6324 = vmatprep.subr.msk.bf16.mxu1 %vm801_vm0, %v5146_v51  ;;  %v274_v52 = vld [vmem:[%s6551_s27 + $0x30] sm:$0xf] }
  0x2c   : > { %v374_v4 = vrot.slane %v373_v53, 4  ;;  %v2185_v9 = vrot.slane %v2183_v61, 5  ;;  %v2187_v17 = vshrl.u32 %v6627_v46, 16  ;;  %v2193_v10 = vshll.u32 %v6636_v54, 16 }
  0x2d   : > { %v384_v8 = vrot.slane %v383_v58, 4  ;;  %5897 = vmatmul.mubr.msk.bf16.vlgmr.msra.gmra.mrb[0].mxu0 %vm752_vm3, %v5294_v2  ;;  %v2180_v12 = vor.u32 %v2179_v6, %v2176_v5  ;;  %v391_v14 = vshrl.u32 %v272_v0, 16  ;;  %v394_v18 = vshll.u32 %v272_v0, 16  ;;  %v275_v58 = vld [vmem:[%s6551_s27 + $0x34] sm:$0xf] }
  0x2e   : > { %v379_v11 = vsel %vm6577_vm4, %v374_v4, %v378_v48  ;;  %5929 = vmatpush3.bf16.msra.mxu0 %v6583_v37  ;;  %v2189_v20 = vrot.slane %v2187_v17, 4  ;;  %v2195_v21 = vrot.slane %v2193_v10, 5  ;;  %v400_v23 = vshll.u32 %v273_v7, 16  ;;  %v303_v4 = vld [vmem:[%s6551_s27 + $0x38] sm:$0x1] }
  0x2f   : > { %v389_v19 = vsel %vm6577_vm4, %v384_v8, %v388_v59  ;;  %v2181_v27 = vrot.slane %v2180_v12, 4  ;;  %v393_v29 = vrot.slane %v391_v14, 4  ;;  %v396_v31 = vrot.slane %v394_v18, 5  ;;  %6329 = vmatprep.subr.msk.bf16.mxu0 %vm801_vm0, %v6570_v26  ;;  %v5256_v12 = vld [vmem:[%s6551_s27 + $0x3c] sm:$0xf] }
  0x30   : > { %v5068_v25 = vcombine.low %v379_v11, %v389_v19  ;;  %v2190_v34 = vor.u32 %v2189_v20, %v2185_v9  ;;  %v402_v35 = vrot.slane %v400_v23, 5  ;;  %v404_v37 = vshrl.u32 %v273_v7, 16  ;;  %v6681_v20 = vld [vmem:[%s6551_s27 + $0x40] sm:$0xf] }
  0x31   : > { %v410_v36 = vshll.u32 %v302_v13, 16  ;;  %v2186_v38 = vsel %vm6577_vm4, %v2181_v27, %v2185_v9  ;;  %v397_v39 = vor.u32 %v396_v31, %v393_v29  ;;  %v2198_v42 = vshrl.u32 %v5253_v24, 16 }
  0x32   : > { %5764 = vmatprep.mubr.msk.bf16.mxu1 %vm752_vm3, %v5068_v25  ;;  %v2201_v43 = vshll.u32 %v5253_v24, 16  ;;  %v2191_v44 = vrot.slane %v2190_v34, 4  ;;  %v406_v45 = vrot.slane %v404_v37, 4  ;;  %v2207_v26 = vshll.u32 %v6656_v33, 16  ;;  %v6686_v34 = vld [vmem:[%s6551_s27 + $0x44] sm:$0x1] }
  0x33   : > { %v412_v47 = vrot.slane %v410_v36, 5  ;;  %v398_v48 = vrot.slane %v397_v39, 4  ;;  %v2200_v49 = vrot.slane %v2198_v42, 4  ;;  %v2211_v51 = vshrl.u32 %v6656_v33, 16  ;;  %v276_v42 = vld [vmem:[%s6551_s27 + $0x3c] sm:$0xf] }
  0x34   : > { %v2203_v50 = vrot.slane %v2201_v43, 5  ;;  %v2196_v53 = vsel %vm6577_vm4, %v2191_v44, %v2195_v21  ;;  %v407_v55 = vor.u32 %v406_v45, %v402_v35  ;;  %v2209_v56 = vrot.slane %v2207_v26, 5  ;;  %v277_v26 = vld [vmem:[%s6551_s27 + $0x40] sm:$0xf] }
  0x35   : > { %v2217_v57 = vshll.u32 %v6664_v40, 16  ;;  %v5295_v59 = vcombine.low %v2186_v38, %v2196_v53  ;;  %v403_v61 = vsel %vm6577_vm4, %v398_v48, %v402_v35  ;;  %v2213_v2 = vrot.slane %v2211_v51, 4 }
  0x36   : > { %v2204_v0 = vor.u32 %v2203_v50, %v2200_v49  ;;  %v408_v5 = vrot.slane %v407_v55, 4  ;;  %v415_v7 = vshrl.u32 %v274_v52, 16  ;;  %v418_v8 = vshll.u32 %v274_v52, 16 }
  0x37   : > { %v2219_v6 = vrot.slane %v2217_v57, 5  ;;  %5900 = vmatprep.mubr.msk.bf16.mxu0 %vm752_vm3, %v5295_v59  ;;  %v2214_v17 = vor.u32 %v2213_v2, %v2209_v56  ;;  %v424_v10 = vshll.u32 %v275_v58, 16  ;;  %v428_v11 = vshrl.u32 %v275_v58, 16  ;;  %v5259_v2 = vld [vmem:[%s6551_s27 + $0x48] sm:$0xf] }
  0x38   : > { %v2205_v9 = vrot.slane %v2204_v0, 4  ;;  %v413_v13 = vsel %vm6577_vm4, %v408_v5, %v412_v47  ;;  %v417_v14 = vrot.slane %v415_v7, 4  ;;  %v420_v18 = vrot.slane %v418_v8, 5  ;;  %v6704_v8 = vld [vmem:[%s6551_s27 + $0x4c] sm:$0xf] }
  0x39   : > { %v434_v19 = vshll.u32 %v303_v4, 16  ;;  %v5069_v21 = vcombine.low %v403_v61, %v413_v13  ;;  %v2215_v24 = vrot.slane %v2214_v17, 4  ;;  %v426_v25 = vrot.slane %v424_v10, 5  ;;  %v304_v61 = vld [vmem:[%s6551_s27 + $0x44] sm:$0x1] }
  0x3a   : > { %v2210_v23 = vsel %vm6577_vm4, %v2205_v9, %v2209_v56  ;;  %v421_v27 = vor.u32 %v420_v18, %v417_v14  ;;  %v430_v29 = vrot.slane %v428_v11, 4  ;;  %v2222_v35 = vshrl.u32 %v5256_v12, 16 }
  0x3b   : > { %v436_v31 = vrot.slane %v434_v19, 5  ;;  %5765 = vmatmul.mubr.msk.bf16.gmra.mrb[4].mxu1 %vm752_vm3, %v5069_v21  ;;  %v2220_v37 = vsel %vm6577_vm4, %v2215_v24, %v2219_v6  ;;  %v2225_v36 = vshll.u32 %v5256_v12, 16  ;;  %v2231_v38 = vshll.u32 %v6681_v20, 16 }
  0x3c   : > { %v2235_v39 = vshrl.u32 %v6681_v20, 16  ;;  %v5296_v43 = vcombine.low %v2210_v23, %v2220_v37  ;;  %v422_v44 = vrot.slane %v421_v27, 4  ;;  %v431_v45 = vor.u32 %v430_v29, %v426_v25  ;;  %v6712_v23 = vld [vmem:[%s6551_s27 + $0x50] sm:$0x1]  ;;  %v6716_v27 = vld [vmem:[%s6551_s27 + $0x48] sm:$0xf] }
  0x3d   : > { %v2224_v47 = vrot.slane %v2222_v35, 4  ;;  %v2227_v48 = vrot.slane %v2225_v36, 5  ;;  %v2233_v49 = vrot.slane %v2231_v38, 5  ;;  %v2241_v51 = vshll.u32 %v6686_v34, 16  ;;  %v6719_v36 = vld [vmem:[%s6551_s27 + $0x4c] sm:$0xf] }
  0x3e   : > { %v2237_v50 = vrot.slane %v2235_v39, 4  ;;  %5901 = vmatmul.mubr.msk.bf16.gmra.mrb[4].mxu0 %vm752_vm3, %v5296_v43  ;;  %v427_v52 = vsel %vm6577_vm4, %v422_v44, %v426_v25  ;;  %v432_v53 = vrot.slane %v431_v45, 4  ;;  %v439_v55 = vshrl.u32 %v276_v42, 16 }
  0x3f   : > { %v442_v56 = vshll.u32 %v276_v42, 16  ;;  %v2228_v57 = vor.u32 %v2227_v48, %v2224_v47  ;;  %v2243_v59 = vrot.slane %v2241_v51, 5  ;;  %v448_v0 = vshll.u32 %v277_v26, 16 }
  0x40   : > { %v2238_v58 = vor.u32 %v2237_v50, %v2233_v49  ;;  %v437_v4 = vsel %vm6577_vm4, %v432_v53, %v436_v31  ;;  %v441_v5 = vrot.slane %v439_v55, 4  ;;  %v452_v7 = vshrl.u32 %v277_v26, 16  ;;  %v305_v26 = vld [vmem:[%s6551_s27 + $0x50] sm:$0x1]  ;;  %v5262_v53 = vld [vmem:[%s6551_s27 + $0x54] sm:$0xf] }
  0x41   : > { %v444_v6 = vrot.slane %v442_v56, 5  ;;  %v5070_v9 = vcombine.low %v427_v52, %v437_v4  ;;  %v2229_v17 = vrot.slane %v2228_v57, 4  ;;  %v450_v11 = vrot.slane %v448_v0, 5  ;;  %v6735_v4 = vld [vmem:[%s6551_s27 + $0x58] sm:$0xf] }
  0x42   : > { %v2239_v10 = vrot.slane %v2238_v58, 4  ;;  %v454_v13 = vrot.slane %v452_v7, 4  ;;  %v458_v14 = vshll.u32 %v304_v61, 16  ;;  %v2246_v18 = vshrl.u32 %v5259_v2, 16 }
  0x43   : > { %v445_v12 = vor.u32 %v444_v6, %v441_v5  ;;  %5768 = vmatprep.mubr.msk.bf16.mxu1 %vm752_vm3, %v5070_v9  ;;  %v2234_v19 = vsel %vm6577_vm4, %v2229_v17, %v2233_v49  ;;  %v2249_v24 = vshll.u32 %v5259_v2, 16  ;;  %v2255_v25 = vshll.u32 %v6704_v8, 16 }
  0x44   : > { %v2244_v21 = vsel %vm6577_vm4, %v2239_v10, %v2243_v59  ;;  %v455_v35 = vor.u32 %v454_v13, %v450_v11  ;;  %v460_v37 = vrot.slane %v458_v14, 5  ;;  %v2248_v38 = vrot.slane %v2246_v18, 4 }
  0x45   : > { %v5297_v29 = vcombine.low %v2234_v19, %v2244_v21  ;;  %v446_v31 = vrot.slane %v445_v12, 4  ;;  %v2251_v39 = vrot.slane %v2249_v24, 5  ;;  %v2257_v42 = vrot.slane %v2255_v25, 5  ;;  %v6741_v12 = vld [vmem:[%s6551_s27 + $0x5c] sm:$0x1] }
  0x46   : > { %v2259_v43 = vshrl.u32 %v6704_v8, 16  ;;  %v456_v45 = vrot.slane %v455_v35, 4  ;;  %v2265_v47 = vshll.u32 %v6712_v23, 16  ;;  %v463_v48 = vshrl.u32 %v6716_v27, 16  ;;  %v6745_v24 = vld [vmem:[%s6551_s27 + $0x54] sm:$0xf] }
  0x47   : > { %5904 = vmatprep.mubr.msk.bf16.mxu0 %vm752_vm3, %v5297_v29  ;;  %v451_v44 = vsel %vm6577_vm4, %v446_v31, %v450_v11  ;;  %v2252_v49 = vor.u32 %v2251_v39, %v2248_v38  ;;  %v466_v51 = vshll.u32 %v6716_v27, 16  ;;  %v472_v52 = vshll.u32 %v6719_v36, 16 }
  0x48   : > { %v2261_v50 = vrot.slane %v2259_v43, 4  ;;  %v461_v55 = vsel %vm6577_vm4, %v456_v45, %v460_v37  ;;  %v2267_v56 = vrot.slane %v2265_v47, 5  ;;  %v465_v57 = vrot.slane %v463_v48, 4  ;;  %v6751_v37 = vld [vmem:[%s6551_s27 + $0x58] sm:$0xf] }
  0x49   : > { %v476_v58 = vshrl.u32 %v6719_v36, 16  ;;  %v5071_v59 = vcombine.low %v451_v44, %v461_v55  ;;  %v2253_v61 = vrot.slane %v2252_v49, 4  ;;  %v468_v2 = vrot.slane %v466_v51, 5 }
  0x4a   : > { %v2262_v0 = vor.u32 %v2261_v50, %v2257_v42  ;;  %v474_v5 = vrot.slane %v472_v52, 5  ;;  %v482_v7 = vshll.u32 %v305_v26, 16  ;;  %v2270_v9 = vshrl.u32 %v5262_v53, 16  ;;  %v306_v26 = vld [vmem:[%s6551_s27 + $0x5c] sm:$0x1] }
  0x4b   : > { %v478_v6 = vrot.slane %v476_v58, 4  ;;  %5769 = vmatmul.mubr.msk.bf16.gmra.mrb[8].mxu1 %vm752_vm3, %v5071_v59  ;;  %v2258_v17 = vsel %vm6577_vm4, %v2253_v61, %v2257_v42  ;;  %v469_v11 = vor.u32 %v468_v2, %v465_v57  ;;  %v2273_v13 = vshll.u32 %v5262_v53, 16  ;;  %v5265_v53 = vld [vmem:[%s6551_s27 + $0x60] sm:$0xf]  ;;  %v6765_v59 = vld [vmem:[%s6551_s27 + $0x64] sm:$0xf] }
  0x4c   : > { %v2263_v10 = vrot.slane %v2262_v0, 4  ;;  %v484_v18 = vrot.slane %v482_v7, 5  ;;  %v2272_v19 = vrot.slane %v2270_v9, 4  ;;  %v2279_v21 = vshll.u32 %v6735_v4, 16  ;;  %v6772_v9 = vld [vmem:[%s6551_s27 + $0x68] sm:$0x1] }
  0x4d   : > { %v479_v14 = vor.u32 %v478_v6, %v474_v5  ;;  %v470_v29 = vrot.slane %v469_v11, 4  ;;  %v2275_v31 = vrot.slane %v2273_v13, 5  ;;  %v2283_v35 = vshrl.u32 %v6735_v4, 16 }
  0x4e   : > { %v2268_v25 = vsel %vm6577_vm4, %v2263_v10, %v2267_v56  ;;  %v2281_v42 = vrot.slane %v2279_v21, 5  ;;  %v2289_v43 = vshll.u32 %v6741_v12, 16  ;;  %v487_v48 = vshrl.u32 %v6745_v24, 16 }
  0x4f   : > { %v5298_v38 = vcombine.low %v2258_v17, %v2268_v25  ;;  %v480_v39 = vrot.slane %v479_v14, 4  ;;  %v475_v44 = vsel %vm6577_vm4, %v470_v29, %v474_v5  ;;  %v2276_v45 = vor.u32 %v2275_v31, %v2272_v19  ;;  %v6776_v19 = vld [vmem:[%s6551_s27 + $0x60] sm:$0xf] }
  0x50   : > { %v2285_v47 = vrot.slane %v2283_v35, 4  ;;  %v2291_v50 = vrot.slane %v2289_v43, 5  ;;  %v490_v51 = vshll.u32 %v6745_v24, 16  ;;  %v496_v52 = vshll.u32 %v6751_v37, 16  ;;  %v6782_v35 = vld [vmem:[%s6551_s27 + $0x64] sm:$0xf] }
  0x51   : > { %5905 = vmatmul.mubr.msk.bf16.gmra.mrb[8].mxu0 %vm752_vm3, %v5298_v38  ;;  %v485_v49 = vsel %vm6577_vm4, %v480_v39, %v484_v18  ;;  %v2277_v56 = vrot.slane %v2276_v45, 4  ;;  %v489_v58 = vrot.slane %v487_v48, 4  ;;  %v500_v2 = vshrl.u32 %v6751_v37, 16 }
  0x52   : > { %v5072_v55 = vcombine.low %v475_v44, %v485_v49  ;;  %v2286_v57 = vor.u32 %v2285_v47, %v2281_v42  ;;  %v492_v61 = vrot.slane %v490_v51, 5  ;;  %v498_v0 = vrot.slane %v496_v52, 5 }
  0x53   : > { %v506_v5 = vshll.u32 %v306_v26, 16  ;;  %v2282_v6 = vsel %vm6577_vm4, %v2277_v56, %v2281_v42  ;;  %v2294_v17 = vshrl.u32 %v5265_v53, 16  ;;  %v2297_v10 = vshll.u32 %v5265_v53, 16 }
  0x54   : > { %5772 = vmatprep.mubr.msk.bf16.mxu1 %vm752_vm3, %v5072_v55  ;;  %v2287_v7 = vrot.slane %v2286_v57, 4  ;;  %v493_v11 = vor.u32 %v492_v61, %v489_v58  ;;  %v502_v13 = vrot.slane %v500_v2, 4  ;;  %v2303_v18 = vshll.u32 %v6765_v59, 16  ;;  %v5325_v58 = vld [vmem:[%s6551_s27 + $0xc] sm:$0xe] }
  0x55   : > { %v508_v14 = vrot.slane %v506_v5, 5  ;;  %v2296_v25 = vrot.slane %v2294_v17, 4  ;;  %v2299_v29 = vrot.slane %v2297_v10, 5  ;;  %v2307_v31 = vshrl.u32 %v6765_v59, 16 }
  0x56   : > { %v2292_v21 = vsel %vm6577_vm4, %v2287_v7, %v2291_v50  ;;  %v494_v39 = vrot.slane %v493_v11, 4  ;;  %v503_v42 = vor.u32 %v502_v13, %v498_v0  ;;  %v2305_v43 = vrot.slane %v2303_v18, 5  ;;  %v307_v50 = vld [vmem:[%s6551_s27 + $0x68] sm:$0x1] }
  0x57   : > { %v5299_v38 = vcombine.low %v2282_v6, %v2292_v21  ;;  %v2300_v44 = vor.u32 %v2299_v29, %v2296_v25  ;;  %v2309_v45 = vrot.slane %v2307_v31, 4  ;;  %v2313_v47 = vshll.u32 %v6772_v9, 16  ;;  %v6810_v29 = vld [vmem:[%s6551_s27 + $0x70] sm:$0xf] }
  0x58   : > { %v511_v26 = vshrl.u32 %v6776_v19, 16  ;;  %v499_v48 = vsel %vm6577_vm4, %v494_v39, %v498_v0  ;;  %v504_v49 = vrot.slane %v503_v42, 4  ;;  %v514_v51 = vshll.u32 %v6776_v19, 16  ;;  %v6797_v0 = vld [vmem:[%s6551_s27 + $0x6c] sm:$0xf] }
  0x59   : > { %5908 = vmatprep.mubr.msk.bf16.mxu0 %vm752_vm3, %v5299_v38  ;;  %v520_v52 = vshll.u32 %v6782_v35, 16  ;;  %v2301_v53 = vrot.slane %v2300_v44, 4  ;;  %v2310_v55 = vor.u32 %v2309_v45, %v2305_v43  ;;  %v2315_v56 = vrot.slane %v2313_v47, 5 }
  0x5a   : > { %v513_v57 = vrot.slane %v511_v26, 4  ;;  %v509_v61 = vsel %vm6577_vm4, %v504_v49, %v508_v14  ;;  %v516_v2 = vrot.slane %v514_v51, 5  ;;  %v524_v6 = vshrl.u32 %v6782_v35, 16  ;;  %v308_v26 = vld [vmem:[%s6551_s27 + $0x74] sm:$0x1] }
  0x5b   : > { %v522_v5 = vrot.slane %v520_v52, 5  ;;  %v5073_v7 = vcombine.low %v499_v48, %v509_v61  ;;  %v2306_v17 = vsel %vm6577_vm4, %v2301_v53, %v2305_v43  ;;  %v2311_v10 = vrot.slane %v2310_v55, 4  ;;  %v5326_v48 = vld [vmem:[%s6551_s27 + $0x18] sm:$0xe] }
  0x5c   : > { %v530_v11 = vshll.u32 %v307_v50, 16  ;;  %v517_v14 = vor.u32 %v516_v2, %v513_v57  ;;  %v526_v18 = vrot.slane %v524_v6, 4  ;;  %v5341_v21 = vrot.slane %v5325_v58, 9  ;;  %v6829_v53 = vld [vmem:[%s6551_s27 + $0x78] sm:$0xf] }
  0x5d   : > { %v2871_v25 = vrot.slane %v2869_v62, 4  ;;  %5773 = vmatmul.mubr.msk.bf16.gmra.mrb[12].mxu1 %vm752_vm3, %v5073_v7  ;;  %v2316_v31 = vsel %vm6577_vm4, %v2311_v10, %v2315_v56  ;;  %v535_v39 = vshrl.u32 %v6797_v0, 16  ;;  %v538_v42 = vshll.u32 %v6797_v0, 16  ;;  %v309_v57 = vld [vmem:[%s6551_s27 + $0x80] sm:$0x1] }
  0x5e   : > { %v532_v38 = vrot.slane %v530_v11, 5  ;;  %v5300_v43 = vcombine.low %v2306_v17, %v2316_v31  ;;  %v518_v44 = vrot.slane %v517_v14, 4  ;;  %v527_v45 = vor.u32 %v526_v18, %v522_v5  ;;  %v5327_v10 = vld [vmem:[%s6551_s27 + $0x24] sm:$0xe] }
  0x5f   : > { %v2870_v47 = vsel %vm6803_vm7, %v5341_v21, %v2869_v62  ;;  %v2873_v49 = vsel %vm6803_vm7, %v2871_v25, %v2872_v63  ;;  %v537_v50 = vrot.slane %v535_v39, 4  ;;  %v540_v51 = vrot.slane %v538_v42, 5  ;;  %v6855_v39 = vld [vmem:[%s6551_s27 + $0x84] sm:$0xf] }
  0x60   : > { %v544_v52 = vshll.u32 %v6810_v29, 16  ;;  %5909 = vmatmul.mubr.msk.bf16.gmra.mrb[12].mxu0 %vm752_vm3, %v5300_v43  ;;  %v523_v15 = vsel %vm6577_vm4, %v518_v44, %v522_v5  ;;  %v528_v62 = vrot.slane %v527_v45, 4  ;;  %v5358_v55 = vcombine.low %v2870_v47, %v2873_v49  ;;  %v6863_v43 = vld [vmem:[%s6551_s27 + $0x88] sm:$0xf] }
  0x61   : > { %v548_v56 = vshrl.u32 %v6810_v29, 16  ;;  %v541_v63 = vor.u32 %v540_v51, %v537_v50  ;;  %v554_v61 = vshll.u32 %v308_v26, 16  ;;  %v5342_v2 = vrot.slane %v5326_v48, 9 }
  0x62   : > { %v546_v58 = vrot.slane %v544_v52, 5  ;;  %v533_v6 = vsel %vm6577_vm4, %v528_v62, %v532_v38  ;;  %5930 = vmatprep.mubr.msk.bf16.mxu0 %vm752_vm3, %v5358_v55  ;;  %v2880_v5 = vsel %vm6803_vm7, %v6620_v30, %v2879_v28  ;;  %v559_v17 = vshrl.u32 %v6829_v53, 16  ;;  %v310_v52 = vld [vmem:[%s6551_s27 + $0x8c] sm:$0x1] }
  0x63   : > { %v550_v7 = vrot.slane %v548_v56, 4  ;;  %v5074_v11 = vcombine.low %v523_v15, %v533_v6  ;;  %v542_v14 = vrot.slane %v541_v63, 4  ;;  %v556_v18 = vrot.slane %v554_v61, 5 }
  0x64   : > { %v2877_v21 = vsel %vm6803_vm7, %v5342_v2, %v2876_v22  ;;  %v561_v38 = vrot.slane %v559_v17, 4  ;;  %v562_v1 = vshll.u32 %v6829_v53, 16  ;;  %v568_v30 = vshll.u32 %v6836_v16, 16  ;;  %v6868_v22 = vld [vmem:[%s8344_s1 + $0xe] sm:$0x3] }
  0x65   : > { %v551_v25 = vor.u32 %v550_v7, %v546_v58  ;;  %v5359_v31 = vcombine.low %v2877_v21, %v2880_v5  ;;  %5776 = vmatprep.mubr.msk.bf16.mxu1 %vm752_vm3, %v5074_v11  ;;  %v547_v28 = vsel %vm6577_vm4, %v542_v14, %v546_v58  ;;  %v572_v60 = vshrl.u32 %v6836_v16, 16  ;;  %v6887_v5 = vld [vmem:[%s6551_s27 + $0x90] sm:$0xf] }
  0x66   : > { %v578_v42 = vshll.u32 %v309_v57, 16  ;;  %v564_v45 = vrot.slane %v562_v1, 5  ;;  %v5343_v47 = vrot.slane %v5327_v10, 9  ;;  %v2883_v26 = vrot.slane %v6627_v46, 5  ;;  %v5328_v57 = vld [vmem:[%s6551_s27 + $0x30] sm:$0xe] }
  0x67   : > { %v552_v44 = vrot.slane %v551_v25, 4  ;;  %v570_v48 = vrot.slane %v568_v30, 5  ;;  %v574_v49 = vrot.slane %v572_v60, 4  ;;  %v2886_v51 = vrot.slane %v6636_v54, 5  ;;  %v6899_v30 = vld [vmem:[%s6551_s27 + $0x94] sm:$0xf] }
  0x68   : > { %v580_v50 = vrot.slane %v578_v42, 5  ;;  %5931 = vmatmul.mubr.msk.bf16.vlgmr.msra.gmra.mrb[0].mxu0 %vm752_vm3, %v5359_v31  ;;  %v565_v62 = vor.u32 %v564_v45, %v561_v38  ;;  %v2884_v55 = vsel %vm6803_vm7, %v5343_v47, %v2883_v26  ;;  %v2885_v56 = vrot.slane %v2883_v26, 4  ;;  %v311_v60 = vld [vmem:[%s6551_s27 + $0x98] sm:$0x1]  ;;  %v5329_v26 = vld [vmem:[%s6551_s27 + $0x3c] sm:$0xe] }
  0x69   : > { %v557_v15 = vsel %vm6577_vm4, %v552_v44, %v556_v18  ;;  %5963 = vmatpush3.bf16.msra.mxu0 %v6587_v41  ;;  %v575_v46 = vor.u32 %v574_v49, %v570_v48  ;;  %v583_v58 = vshrl.u32 %v6855_v39, 16  ;;  %v586_v54 = vshll.u32 %v6855_v39, 16 }
  0x6a   : > { %v5075_v63 = vcombine.low %v547_v28, %v557_v15  ;;  %v566_v61 = vrot.slane %v565_v62, 4  ;;  %v2887_v2 = vsel %vm6803_vm7, %v2885_v56, %v2886_v51  ;;  %v592_v6 = vshll.u32 %v6863_v43, 16  ;;  %6330 = vmatprep.subr.msk.bf16.mxu0 %vm801_vm0, %v6868_v22 }
  0x6b   : > { %v596_v7 = vshrl.u32 %v6863_v43, 16  ;;  %v576_v41 = vrot.slane %v575_v46, 4  ;;  %v5360_v17 = vcombine.low %v2884_v55, %v2887_v2  ;;  %v585_v10 = vrot.slane %v583_v58, 4  ;;  %v6919_v46 = vld [vmem:[%s6551_s27 + $0xa0] sm:$0xf] }
  0x6c   : > { %5777 = vmatmul.mubr.msk.bf16.gmra.mrb[16].mxu1 %vm752_vm3, %v5075_v63  ;;  %v588_v11 = vrot.slane %v586_v54, 5  ;;  %v571_v14 = vsel %vm6577_vm4, %v566_v61, %v570_v48  ;;  %v594_v18 = vrot.slane %v592_v6, 5  ;;  %v602_v25 = vshll.u32 %v310_v52, 16  ;;  %v6908_v52 = vld [vmem:[%s6551_s27 + $0x9c] sm:$0xf] }
  0x6d   : > { %v598_v21 = vrot.slane %v596_v7, 4  ;;  %v581_v31 = vsel %vm6577_vm4, %v576_v41, %v580_v50  ;;  %5934 = vmatprep.mubr.msk.bf16.mxu0 %vm752_vm3, %v5360_v17  ;;  %v5344_v1 = vrot.slane %v5328_v57, 9  ;;  %v2890_v28 = vrot.slane %v6656_v33, 5 }
  0x6e   : > { %v589_v38 = vor.u32 %v588_v11, %v585_v10  ;;  %v5076_v42 = vcombine.low %v571_v14, %v581_v31  ;;  %v604_v45 = vrot.slane %v602_v25, 5  ;;  %v2893_v47 = vrot.slane %v6664_v40, 5  ;;  %v312_v10 = vld [vmem:[%s6551_s27 + $0xa4] sm:$0x1]  ;;  %v5330_v11 = vld [vmem:[%s6551_s27 + $0x48] sm:$0xe] }
  0x6f   : > { %v599_v44 = vor.u32 %v598_v21, %v594_v18  ;;  %v2891_v49 = vsel %vm6803_vm7, %v5344_v1, %v2890_v28  ;;  %v2892_v50 = vrot.slane %v2890_v28, 4  ;;  %v607_v51 = vshrl.u32 %v6887_v5, 16 }
  0x70   : > { %v590_v48 = vrot.slane %v589_v38, 4  ;;  %5780 = vmatprep.mubr.msk.bf16.mxu1 %vm752_vm3, %v5076_v42  ;;  %v610_v15 = vshll.u32 %v6887_v5, 16  ;;  %v616_v62 = vshll.u32 %v6899_v30, 16  ;;  %v620_v40 = vshrl.u32 %v6899_v30, 16 }
  0x71   : > { %v600_v33 = vrot.slane %v599_v44, 4  ;;  %v2894_v56 = vsel %vm6803_vm7, %v2892_v50, %v2893_v47  ;;  %v609_v57 = vrot.slane %v607_v51, 4  ;;  %v626_v63 = vshll.u32 %v311_v60, 16 }
  0x72   : > { %v595_v55 = vsel %vm6577_vm4, %v590_v48, %v594_v18  ;;  %v5361_v54 = vcombine.low %v2891_v49, %v2894_v56  ;;  %v612_v61 = vrot.slane %v610_v15, 5  ;;  %v618_v2 = vrot.slane %v616_v62, 5  ;;  %v6945_v56 = vld [vmem:[%s6551_s27 + $0xac] sm:$0xf] }
  0x73   : > { %v605_v58 = vsel %vm6577_vm4, %v600_v33, %v604_v45  ;;  %v622_v7 = vrot.slane %v620_v40, 4  ;;  %v628_v41 = vrot.slane %v626_v63, 5  ;;  %v5345_v17 = vrot.slane %v5329_v26, 9  ;;  %v6940_v33 = vld [vmem:[%s6551_s27 + $0xa8] sm:$0xf] }
  0x74   : > { %v5077_v6 = vcombine.low %v595_v55, %v605_v58  ;;  %5935 = vmatmul.mubr.msk.bf16.gmra.mrb[4].mxu0 %vm752_vm3, %v5361_v54  ;;  %v613_v14 = vor.u32 %v612_v61, %v609_v57  ;;  %v2897_v18 = vrot.slane %v6681_v20, 5  ;;  %v2900_v21 = vrot.slane %v6686_v34, 5  ;;  %v313_v61 = vld [vmem:[%s6551_s27 + $0xb0] sm:$0x1] }
  0x75   : > { %v631_v25 = vshrl.u32 %v6908_v52, 16  ;;  %v623_v31 = vor.u32 %v622_v7, %v618_v2  ;;  %v634_v38 = vshll.u32 %v6908_v52, 16  ;;  %v640_v1 = vshll.u32 %v6919_v46, 16 }
  0x76   : > { %5781 = vmatmul.mubr.msk.bf16.gmra.mrb[20].mxu1 %vm752_vm3, %v5077_v6  ;;  %v644_v28 = vshrl.u32 %v6919_v46, 16  ;;  %v614_v60 = vrot.slane %v613_v14, 4  ;;  %v2898_v42 = vsel %vm6803_vm7, %v5345_v17, %v2897_v18  ;;  %v2899_v20 = vrot.slane %v2897_v18, 4  ;;  %v6960_v14 = vld [vmem:[%s6551_s27 + $0xb4] sm:$0xf] }
  0x77   : > { %v633_v44 = vrot.slane %v631_v25, 4  ;;  %v624_v34 = vrot.slane %v623_v31, 4  ;;  %v636_v45 = vrot.slane %v634_v38, 5  ;;  %v642_v47 = vrot.slane %v640_v1, 5 }
  0x78   : > { %v646_v26 = vrot.slane %v644_v28, 4  ;;  %v619_v48 = vsel %vm6577_vm4, %v614_v60, %v618_v2  ;;  %v2901_v49 = vsel %vm6803_vm7, %v2899_v20, %v2900_v21  ;;  %v650_v50 = vshll.u32 %v312_v10, 16  ;;  %v5331_v2 = vld [vmem:[%s6551_s27 + $0x54] sm:$0xe] }
  0x79   : > { %v5346_v51 = vrot.slane %v5330_v11, 9  ;;  %v629_v15 = vsel %vm6577_vm4, %v624_v34, %v628_v41  ;;  %v5362_v62 = vcombine.low %v2898_v42, %v2901_v49  ;;  %v637_v40 = vor.u32 %v636_v45, %v633_v44  ;;  %v6969_v42 = vld [vmem:[%s6551_s27 + $0xb8] sm:$0xf]  ;;  %v314_v49 = vld [vmem:[%s6551_s27 + $0xbc] sm:$0x1] }
  0x7a   : > { %v647_v55 = vor.u32 %v646_v26, %v642_v47  ;;  %v5078_v57 = vcombine.low %v619_v48, %v629_v15  ;;  %v652_v63 = vrot.slane %v650_v50, 5  ;;  %v2904_v58 = vrot.slane %v6704_v8, 5 }
  0x7b   : > { %v2907_v54 = vrot.slane %v6712_v23, 5  ;;  %5938 = vmatprep.mubr.msk.bf16.mxu0 %vm752_vm3, %v5362_v62  ;;  %v638_v6 = vrot.slane %v637_v40, 4  ;;  %v655_v41 = vshrl.u32 %v6940_v33, 16  ;;  %v658_v17 = vshll.u32 %v6940_v33, 16 }
  0x7c   : > { %v648_v7 = vrot.slane %v647_v55, 4  ;;  %5784 = vmatprep.mubr.msk.bf16.mxu1 %vm752_vm3, %v5078_v57  ;;  %v2905_v10 = vsel %vm6803_vm7, %v5346_v51, %v2904_v58  ;;  %v2906_v11 = vrot.slane %v2904_v58, 4  ;;  %v664_v8 = vshll.u32 %v6945_v56, 16  ;;  %v5332_v55 = vld [vmem:[%s6551_s27 + $0x60] sm:$0xe] }
  0x7d   : > { %v668_v23 = vshrl.u32 %v6945_v56, 16  ;;  %v643_v18 = vsel %vm6577_vm4, %v638_v6, %v642_v47  ;;  %v657_v25 = vrot.slane %v655_v41, 4  ;;  %v660_v31 = vrot.slane %v658_v17, 5  ;;  %v5333_v6 = vld [vmem:[%s6551_s27 + $0x6c] sm:$0xe] }
  0x7e   : > { %v653_v21 = vsel %vm6577_vm4, %v648_v7, %v652_v63  ;;  %v2908_v1 = vsel %vm6803_vm7, %v2906_v11, %v2907_v54  ;;  %v666_v28 = vrot.slane %v664_v8, 5  ;;  %v674_v34 = vshll.u32 %v313_v61, 16  ;;  %v5269_v11 = vld [vmem:[%s6551_s27 + $0x70] sm:$0xf]  ;;  %v5270_v8 = vld [vmem:[%s6551_s27 + $0x74] sm:$0x1] }
  0x7f   : > { %v5079_v38 = vcombine.low %v643_v18, %v653_v21  ;;  %v670_v60 = vrot.slane %v668_v23, 4  ;;  %v5363_v20 = vcombine.low %v2905_v10, %v2908_v1  ;;  %v661_v44 = vor.u32 %v660_v31, %v657_v25 }
  0x80   : > { %v5347_v45 = vrot.slane %v5331_v2, 9  ;;  %v2911_v26 = vrot.slane %v6735_v4, 5  ;;  %v2914_v48 = vrot.slane %v6741_v12, 5  ;;  %v679_v50 = vshrl.u32 %v6960_v14, 16 }
  0x81   : > { %5785 = vmatmul.mubr.msk.bf16.gmra.mrb[24].mxu1 %vm752_vm3, %v5079_v38  ;;  %v671_v47 = vor.u32 %v670_v60, %v666_v28  ;;  %5939 = vmatmul.mubr.msk.bf16.gmra.mrb[8].mxu0 %vm752_vm3, %v5363_v20  ;;  %v662_v51 = vrot.slane %v661_v44, 4  ;;  %v676_v15 = vrot.slane %v674_v34, 5  ;;  %v682_v62 = vshll.u32 %v6960_v14, 16 }
  0x82   : > { %v688_v40 = vshll.u32 %v6969_v42, 16  ;;  %v2912_v4 = vsel %vm6803_vm7, %v5347_v45, %v2911_v26  ;;  %v2913_v12 = vrot.slane %v2911_v26, 4  ;;  %v681_v63 = vrot.slane %v679_v50, 4 }
  0x83   : > { %v672_v57 = vrot.slane %v671_v47, 4  ;;  %v667_v58 = vsel %vm6577_vm4, %v662_v51, %v666_v28  ;;  %v684_v54 = vrot.slane %v682_v62, 5  ;;  %v692_v2 = vshrl.u32 %v6969_v42, 16  ;;  %v5334_v47 = vld [vmem:[%s6551_s27 + $0x78] sm:$0xe] }
  0x84   : > { %v690_v61 = vrot.slane %v688_v40, 5  ;;  %v2915_v41 = vsel %vm6803_vm7, %v2913_v12, %v2914_v48  ;;  %v698_v17 = vshll.u32 %v314_v49, 16  ;;  %v5348_v10 = vrot.slane %v5332_v55, 9  ;;  %v6405_v51 = vld [vmem:[%s6551_s27] sm:$0xf] }
  0x85   : > { %v677_v7 = vsel %vm6577_vm4, %v672_v57, %v676_v15  ;;  %v5364_v18 = vcombine.low %v2912_v4, %v2915_v41  ;;  %v685_v21 = vor.u32 %v684_v54, %v681_v63  ;;  %v694_v25 = vrot.slane %v692_v2, 4  ;;  %v7007_v15 = vld [vmem:[%s6551_s27 + $0x4] sm:$0xf]  ;;  %v7011_v40 = vld [vmem:[%s6551_s27 + $0x7c] sm:$0xf] }
  0x86   : > { %v5080_v23 = vcombine.low %v667_v58, %v677_v7  ;;  %v700_v31 = vrot.slane %v698_v17, 5  ;;  %v2918_v38 = vrot.slane %v6765_v59, 5  ;;  %v2921_v1 = vrot.slane %v6772_v9, 5  ;;  %v7014_v55 = vld [vmem:[%s6551_s27 + $0x80] sm:$0x1] }
  0x87   : > { %v5349_v28 = vrot.slane %v5333_v6, 9  ;;  %5942 = vmatprep.mubr.msk.bf16.mxu0 %vm752_vm3, %v5364_v18  ;;  %v686_v60 = vrot.slane %v685_v21, 4  ;;  %v695_v20 = vor.u32 %v694_v25, %v690_v61  ;;  %v2925_v44 = vrot.slane %v5269_v11, 5  ;;  %v5275_v57 = vld [vmem:[%s6551_s27 + $0x88] sm:$0xf] }
  0x88   : > { %5788 = vmatprep.mubr.msk.bf16.mxu1 %vm752_vm3, %v5080_v23  ;;  %v2928_v34 = vrot.slane %v5270_v8, 5  ;;  %v2919_v45 = vsel %vm6803_vm7, %v5348_v10, %v2918_v38  ;;  %v2920_v59 = vrot.slane %v2918_v38, 4  ;;  %v5098_v62 = vcombine.low %v6405_v51, %v7007_v15  ;;  %v5276_v54 = vld [vmem:[%s6551_s27 + $0x8c] sm:$0x1]  ;;  %v5278_v17 = vld [vmem:[%s6551_s27 + $0x94] sm:$0xf] }
  0x89   : > { %v691_v9 = vsel %vm6577_vm4, %v686_v60, %v690_v61  ;;  %v696_v26 = vrot.slane %v695_v20, 4  ;;  %v2926_v48 = vsel %vm6803_vm7, %v5349_v28, %v2925_v44  ;;  %v2927_v49 = vrot.slane %v2925_v44, 4  ;;  %v5335_v61 = vld [vmem:[%s6551_s27 + $0x84] sm:$0xe]  ;;  %v5336_v23 = vld [vmem:[%s6551_s27 + $0x90] sm:$0xe] }
  0x8a   : > { %v2922_v50 = vsel %vm6803_vm7, %v2920_v59, %v2921_v1  ;;  %v5350_v58 = vrot.slane %v5334_v47, 9  ;;  %v2932_v7 = vrot.slane %v7011_v40, 5  ;;  %v2935_v41 = vrot.slane %v7014_v55, 5  ;;  %v5279_v25 = vld [vmem:[%s6551_s27 + $0x98] sm:$0x1] }
  0x8b   : > { %v701_v4 = vsel %vm6577_vm4, %v696_v26, %v700_v31  ;;  %v5365_v12 = vcombine.low %v2919_v45, %v2922_v50  ;;  %v2929_v63 = vsel %vm6803_vm7, %v2927_v49, %v2928_v34  ;;  %v5351_v10 = vrot.slane %v5335_v61, 9  ;;  %v5281_v31 = vld [vmem:[%s6551_s27 + $0xa0] sm:$0xf]  ;;  %v5282_v60 = vld [vmem:[%s6551_s27 + $0xa4] sm:$0x1] }
  0x8c   : > { %v5081_v2 = vcombine.low %v691_v9, %v701_v4  ;;  %v5366_v6 = vcombine.low %v2926_v48, %v2929_v63  ;;  %v2939_v11 = vrot.slane %v5275_v57, 5  ;;  %v2942_v8 = vrot.slane %v5276_v54, 5  ;;  %v5337_v20 = vld [vmem:[%s6551_s27 + $0x9c] sm:$0xe]  ;;  %v6407_v44 = vld [vmem:[%s6551_s27 + $0xc] sm:$0xf] }
  0x8d   : > { %5943 = vmatmul.mubr.msk.bf16.gmra.mrb[12].mxu0 %vm752_vm3, %v5365_v12  ;;  %v2933_v18 = vsel %vm6803_vm7, %v5350_v58, %v2932_v7  ;;  %v2934_v21 = vrot.slane %v2932_v7, 4  ;;  %v2946_v28 = vrot.slane %v5278_v17, 5  ;;  %v7041_v34 = vld [vmem:[%s6551_s27 + $0x10] sm:$0xf]  ;;  %v6409_v47 = vld [vmem:[%s6551_s27 + $0x18] sm:$0xf] }
  0x8e   : > { %5789 = vmatmul.mubr.msk.bf16.gmra.mrb[28].mxu1 %vm752_vm3, %v5081_v2  ;;  %5946 = vmatprep.mubr.msk.bf16.mxu0 %vm752_vm3, %v5366_v6  ;;  %v2940_v38 = vsel %vm6803_vm7, %v5351_v10, %v2939_v11  ;;  %v2941_v1 = vrot.slane %v2939_v11, 4  ;;  %v5099_v45 = vcombine.low %v6407_v44, %v7041_v34  ;;  %v7048_v9 = vld [vmem:[%s6551_s27 + $0x1c] sm:$0xf]  ;;  %v5352_v48 = vrot.slane %v5336_v23, 9  ;;  %v5284_v57 = vld [vmem:[%s6551_s27 + $0xac] sm:$0xf] }
  0x8f   : > { %5794 = vmatprep.mubr.msk.bf16.mxu1 %vm752_vm3, %v5098_v62  ;;  %v2936_v59 = vsel %vm6803_vm7, %v2934_v21, %v2935_v41  ;;  %v5100_v26 = vcombine.low %v6409_v47, %v7048_v9  ;;  %v2948_v51 = vrot.slane %v2946_v28, 4  ;;  %v2949_v62 = vrot.slane %v5279_v25, 5  ;;  %v6411_v54 = vld [vmem:[%s8344_s1 + $0x4] sm:$0x3]  ;;  %v5287_v2 = vld [vmem:[%s6551_s27 + $0xb8] sm:$0xf] }
  0x90   : > { %v5367_v49 = vcombine.low %v2933_v18, %v2936_v59  ;;  %v2943_v50 = vsel %vm6803_vm7, %v2941_v1, %v2942_v8  ;;  %v5353_v12 = vrot.slane %v5337_v20, 9  ;;  %v2953_v63 = vrot.slane %v5281_v31, 5  ;;  %v7063_v7 = vld [vmem:[%s8344_s1 + $0x6] sm:$0x3]  ;;  %v5285_v10 = vld [vmem:[%s6551_s27 + $0xb0] sm:$0x1] }
  0x91   : > { %v5368_v4 = vcombine.low %v2940_v38, %v2943_v50  ;;  %v2956_v58 = vrot.slane %v5282_v60, 5  ;;  %v1520_v61 = vsel %vm801_vm0, %v6411_v54, 0  ;;  %v2947_v41 = vsel %vm6803_vm7, %v5352_v48, %v2946_v28  ;;  %v5338_v11 = vld [vmem:[%s6551_s27 + $0xa8] sm:$0xe]  ;;  %v5288_v25 = vld [vmem:[%s6551_s27 + $0xbc] sm:$0x1] }
  0x92   : > { %v2955_v6 = vrot.slane %v2953_v63, 4  ;;  %v2950_v17 = vsel %vm6803_vm7, %v2948_v51, %v2949_v62  ;;  %v2960_v8 = vrot.slane %v5284_v57, 5  ;;  %v2954_v23 = vsel %vm6803_vm7, %v5353_v12, %v2953_v63  ;;  %v5339_v31 = vld [vmem:[%s6551_s27 + $0xb4] sm:$0xe]  ;;  %v6412_v38 = vld [vmem:[%s6551_s27 + $0x24] sm:$0xf] }
  0x93   : > { %v2967_v21 = vrot.slane %v5287_v2, 5  ;;  %v7084_v1 = vld [vmem:[%s6551_s27 + $0x28] sm:$0xf]  ;;  %v5369_v60 = vcombine.low %v2947_v41, %v2950_v17  ;;  %v5354_v44 = vrot.slane %v5338_v11, 9  ;;  %v2963_v59 = vrot.slane %v5285_v10, 5 }
  0x94   : > { %v2957_v18 = vsel %vm6803_vm7, %v2955_v6, %v2956_v58  ;;  %v5101_v28 = vcombine.low %v6412_v38, %v7084_v1  ;;  %v6414_v47 = vld [vmem:[%s6551_s27 + $0x30] sm:$0xf]  ;;  %v2970_v51 = vrot.slane %v5288_v25, 5  ;;  %v5290_v62 = vld [vmem:[%s6551_s27 + $0xc4] sm:$0xf]  ;;  %v2355_v25 = vshrl.u32 %v7011_v40, 16 }
  0x95   : > { %5947 = vmatmul.mubr.msk.bf16.gmra.mrb[16].mxu0 %vm752_vm3, %v5367_v49  ;;  %v5370_v20 = vcombine.low %v2954_v23, %v2957_v18  ;;  %v5355_v49 = vrot.slane %v5339_v31, 9  ;;  %v2969_v50 = vrot.slane %v2967_v21, 4  ;;  %v2961_v57 = vsel %vm6803_vm7, %v5354_v44, %v2960_v8  ;;  %v5340_v12 = vld [vmem:[%s6551_s27 + $0xc0] sm:$0xe]  ;;  %v6416_v41 = vld [vmem:[%s6551_s27 + $0x3c] sm:$0xf] }
  0x96   : > { %5795 = vmatmul.mubr.msk.bf16.vlgmr.msra.gmra.mrb[0].mxu1 %vm752_vm3, %v5099_v45  ;;  %5950 = vmatprep.mubr.msk.bf16.mxu0 %vm752_vm3, %v5368_v4  ;;  %v2962_v45 = vrot.slane %v2960_v8, 4  ;;  %v2974_v63 = vrot.slane %v5290_v62, 5  ;;  %v5356_v6 = vrot.slane %v5340_v12, 9  ;;  %v7109_v17 = vld [vmem:[%s6551_s27 + $0x40] sm:$0xf]  ;;  %v5104_v18 = vcombine.low %v6716_v27, %v6719_v36  ;;  %v6368_v62 = vld [vmem:[%s6551_s27 + $0x24] sm:$0xff]  }
  0x97   : > { %5827 = vmatpush3.bf16.msra.mxu1 %v1520_v61  ;;  %5798 = vmatprep.mubr.msk.bf16.mxu1 %vm752_vm3, %v5100_v26  ;;  %v7089_v26 = vld [vmem:[%s6551_s27 + $0x34] sm:$0xf]  ;;  %v2968_v58 = vsel %vm6803_vm7, %v5355_v49, %v2967_v21  ;;  %v2971_v54 = vsel %vm6803_vm7, %v2969_v50, %v2970_v51  ;;  %v5291_v61 = vld [vmem:[%s6551_s27 + $0xc8] sm:$0x1]  ;;  %v5103_v10 = vcombine.low %v6416_v41, %v7109_v17  ;;  %v2351_v21 = vshll.u32 %v7011_v40, 16 }
  0x98   : > { %6325 = vmatprep.subr.msk.bf16.mxu1 %vm801_vm0, %v7063_v7  ;;  %v5102_v48 = vcombine.low %v6414_v47, %v7089_v26  ;;  %v2964_v4 = vsel %vm6803_vm7, %v2962_v45, %v2963_v59  ;;  %v5372_v11 = vcombine.low %v2968_v58, %v2971_v54  ;;  %v2976_v8 = vrot.slane %v2974_v63, 4  ;;  %v1258_v45 = vld [vmem:[%s6551_s27] sm:$0xe]  ;;  %v1259_v59 = vld [vmem:[%s6551_s27 + $0xc] sm:$0xe] }
  0x99   : > { %v5371_v2 = vcombine.low %v2961_v57, %v2964_v4  ;;  %v2977_v23 = vrot.slane %v5291_v61, 5  ;;  %v2975_v31 = vsel %vm6803_vm7, %v5356_v6, %v2974_v63  ;;  %v7124_v27 = vrot.slane %v2351_v21, 5  ;;  %v1262_v41 = vld [vmem:[%s6551_s27 + $0x30] sm:$0xe] }
  0x9a   : > { %v2357_v36 = vrot.slane %v2355_v25, 4  ;;  %v5106_v44 = vcombine.low %v6776_v19, %v6782_v35  ;;  %v2361_v47 = vshll.u32 %v7014_v55, 16  ;;  %v5130_v19 = vrot.slane %v1258_v45, 9 }
  0x9b   : > { %v2978_v38 = vsel %vm6803_vm7, %v2976_v8, %v2977_v23  ;;  %8365 = vst [vmem:[#allocation3_spill] sm:$0xff] %v7124_v27  ;;  %v5131_v35 = vrot.slane %v1259_v59, 9  ;;  %v1325_v4 = vrot.slane %v7048_v9, 5  ;;  %v1332_v12 = vrot.slane %v7084_v1, 5  ;;  %v1263_v8 = vld [vmem:[%s6551_s27 + $0x3c] sm:$0xe] }
  0x9c   : > { %v5373_v40 = vcombine.low %v2975_v31, %v2978_v38  ;;  %v2358_v49 = vor.u32 %v2357_v36, %v7124_v27  ;;  %v7144_v51 = vrot.slane %v2361_v47, 5  ;;  %v5107_v58 = vcombine.low %v6797_v0, %v6810_v29  ;;  %v1264_v31 = vld [vmem:[%s6551_s27 + $0x48] sm:$0xe]  ;;  %v6422_v59 = vld [vmem:[%s6551_s27 + $0x38] sm:$0x1] }
  0x9d   : > { %5951 = vmatmul.mubr.msk.bf16.gmra.mrb[20].mxu0 %vm752_vm3, %v5369_v60  ;;  %v5105_v60 = vcombine.low %v6745_v24, %v6751_v37  ;;  %v6419_v24 = vld [vmem:[%s6551_s27 + $0x14] sm:$0x1]  ;;  %v4166_v54 = vsel %vm801_vm0, %v6868_v22, 0  ;;  %v5108_v61 = vcombine.low %v6829_v53, %v6836_v16  ;;  %v5109_v6 = vcombine.low %v6855_v39, %v6863_v43  ;;  %v6420_v16 = vld [vmem:[%s6551_s27 + $0x20] sm:$0x1] }
  0x9e   : > { %5799 = vmatmul.mubr.msk.bf16.gmra.mrb[4].mxu1 %vm752_vm3, %v5101_v28  ;;  %5954 = vmatprep.mubr.msk.bf16.mxu0 %vm752_vm3, %v5370_v20  ;;  %v1318_v28 = vrot.slane %v7041_v34, 5  ;;  %v6366_v20 = vld [vmem:[%s6551_s27 + $0x18] sm:$0xff]   ;;  %v6418_v34 = vld [vmem:[%s6551_s27 + $0x8] sm:$0x1]  ;;  %v1321_v37 = vrot.slane %v6419_v24, 5  ;;  %8366 = vst [vmem:[#allocation4_spill] sm:$0xff] %v7144_v51  ;;  %v5110_v9 = vcombine.low %v6887_v5, %v6899_v30 }
  0x9f   : > { %5802 = vmatprep.mubr.msk.bf16.mxu1 %vm752_vm3, %v5102_v48  ;;  %v1311_v48 = vrot.slane %v7007_v15, 5  ;;  %v1314_v50 = vrot.slane %v6418_v34, 5  ;;  %v1260_v15 = vld [vmem:[%s6551_s27 + $0x18] sm:$0xe]  ;;  %v7149_v63 = vrot.slane %v2358_v49, 4  ;;  %v1328_v22 = vrot.slane %v6420_v16, 5 }
  0xa0   : > { %v1320_v55 = vrot.slane %v1318_v28, 4  ;;  %v5132_v1 = vrot.slane %v1260_v15, 9  ;;  %v7171_v29 = vsel %vm6803_vm7, %v5131_v35, %v1318_v28  ;;  %v1334_v25 = vrot.slane %v1332_v12, 4  ;;  %v5455_v24 = vld [vmem:[%s6551_s27 + $0x18] sm:$0xf] }
  0xa1   : > { %v1313_v57 = vrot.slane %v1311_v48, 4  ;;  %8367 = vst [vmem:[#allocation5_spill] sm:$0xff] %v7149_v63  ;;  %v7167_v0 = vsel %vm6803_vm7, %v5130_v19, %v1311_v48  ;;  %v1342_v47 = vrot.slane %v6422_v59, 5  ;;  %v7208_v49 = vsel %vm801_vm0, %v7063_v7, 0  ;;  %v5456_v7 = vld [vmem:[%s6551_s27 + $0x1c] sm:$0xf] }
  0xa2   : > { %v7175_v53 = vsel %vm6803_vm7, %v1320_v55, %v1321_v37  ;;  %v7212_v34 = vsel %vm6803_vm7, %v5132_v1, %v1325_v4  ;;  %v6372_v37 = vld [vmem:[%s6551_s27 + $0x3c] sm:$0xff]   ;;  %v5135_v35 = vrot.slane %v1263_v8, 9  ;;  %v6423_v55 = vld [vmem:[%s6551_s27 + $0x44] sm:$0x1]  ;;  %v3687_v8 = vshll.u32 %v5455_v24, 16 }
  0xa3   : > { %v7186_v23 = vsel %vm6803_vm7, %v1313_v57, %v1314_v50  ;;  %v1265_v50 = vld [vmem:[%s6551_s27 + $0x54] sm:$0xe]  ;;  %v1349_v15 = vrot.slane %v6423_v55, 5  ;;  %v5459_v39 = vld [vmem:[%s6551_s27 + $0x28] sm:$0xf] }
  0xa4   : > { %v6430_v5 = vld [vmem:[%s6551_s27 + $0x70] sm:$0xf] }
  0xa5   : > { %5955 = vmatmul.mubr.msk.bf16.gmra.mrb[24].mxu0 %vm752_vm3, %v5371_v2  ;;  %v1261_v2 = vld [vmem:[%s6551_s27 + $0x24] sm:$0xe]  ;;  %v1374_v30 = vrot.slane %v6430_v5, 5 }
  0xa6   : > { %5803 = vmatmul.mubr.msk.bf16.gmra.mrb[8].mxu1 %vm752_vm3, %v5103_v10  ;;  %5958 = vmatprep.mubr.msk.bf16.mxu0 %vm752_vm3, %v5372_v11  ;;  %v1339_v10 = vrot.slane %v7089_v26, 5  ;;  %v6370_v11 = vld [vmem:[%s6551_s27 + $0x30] sm:$0xff]   ;;  %v5133_v21 = vrot.slane %v1261_v2, 9 }
  0xa7   : > { %5806 = vmatprep.mubr.msk.bf16.mxu1 %vm752_vm3, %v5104_v18  ;;  %v7182_v26 = vld [vmem:[%s8344_s1 + $0x10] sm:$0x3]  ;;  %v1327_v18 = vrot.slane %v1325_v4, 4  ;;  %v1376_v48 = vrot.slane %v1374_v30, 4 }
  0xa8   : > { %v1341_v45 = vrot.slane %v1339_v10, 4  ;;  %v7219_v19 = vsel %vm6803_vm7, %v5133_v21, %v1332_v12  ;;  %v3697_v21 = vshrl.u32 %v5456_v7, 16 }
  0xa9   : > { %v7228_v4 = vsel %vm6803_vm7, %v1327_v18, %v1328_v22  ;;  %v3684_v22 = vshrl.u32 %v5455_v24, 16  ;;  %v3693_v18 = vshll.u32 %v5456_v7, 16  ;;  %v5458_v24 = vld [vmem:[%s6551_s27 + $0x24] sm:$0xf] }
  0xaa   : > { %v7241_v1 = vsel %vm6803_vm7, %v1341_v45, %v1342_v47 }
  0xab   : > { %v3686_v43 = vrot.slane %v3684_v22, 4  ;;  %v7283_v7 = vrot.slane %v3693_v18, 5  ;;  %v3711_v22 = vshll.u32 %v5458_v24, 16  ;;  %v3721_v18 = vshrl.u32 %v5459_v39, 16 }
  0xad   : > { %5959 = vmatmul.mubr.msk.bf16.gmra.mrb[28].mxu0 %vm752_vm3, %v5373_v40  ;;  %v6421_v40 = vld [vmem:[%s6551_s27 + $0x2c] sm:$0x1]  ;;  %v3713_v27 = vrot.slane %v3711_v22, 5 }
  0xae   : > { %5807 = vmatmul.mubr.msk.bf16.gmra.mrb[12].mxu1 %vm752_vm3, %v5105_v60  ;;  %5964 = vmatprep.mubr.msk.bf16.mxu0 %vm752_vm3, %v6366_v20  ;;  %v1335_v28 = vrot.slane %v6421_v40, 5  ;;  %v1346_v60 = vrot.slane %v7109_v17, 5  ;;  %v6426_v40 = vld [vmem:[%s6551_s27 + $0x50] sm:$0x1]  ;;  %v6431_v17 = vld [vmem:[%s6551_s27 + $0x74] sm:$0x1] }
  0xaf   : > { %5810 = vmatprep.mubr.msk.bf16.mxu1 %vm752_vm3, %v5106_v44  ;;  %v5134_v44 = vrot.slane %v1262_v41, 9  ;;  %v5137_v41 = vrot.slane %v1265_v50, 9  ;;  %v1266_v50 = vld [vmem:[%s6551_s27 + $0x60] sm:$0xe]  ;;  %v5460_v20 = vld [vmem:[%s6551_s27 + $0x2c] sm:$0x1] }
  0xb0   : > { %v1348_v12 = vrot.slane %v1346_v60, 4  ;;  %v7254_v45 = vsel %vm6803_vm7, %v5135_v35, %v1346_v60  ;;  %v6427_v35 = vld [vmem:[%s6551_s27 + $0x5c] sm:$0x1] }
  0xb1   : > { %v7237_v2 = vsel %vm6803_vm7, %v5134_v44, %v1339_v10  ;;  %v1363_v55 = vrot.slane %v6427_v35, 5  ;;  %v1267_v35 = vld [vmem:[%s6551_s27 + $0x6c] sm:$0xe] }
  0xb2   : > { %v7258_v59 = vsel %vm6803_vm7, %v1348_v12, %v1349_v15  ;;  %v6428_v15 = vld [vmem:[%s6551_s27 + $0x64] sm:$0xf]  ;;  %v3699_v12 = vrot.slane %v3697_v21, 4  ;;  %v5139_v5 = vrot.slane %v1267_v35, 9 }
  0xb3   : > { %v6378_v21 = vld [vmem:[%s6551_s27 + $0x60] sm:$0xff]  }
  0xb5   : > { %5965 = vmatmul.mubr.msk.bf16.vlgmr.msra.gmra.mrb[0].mxu0 %vm752_vm3, %v6368_v62  ;;  %v6424_v62 = vld [vmem:[%s6551_s27 + $0x4c] sm:$0xf] }
  0xb6   : > { %5811 = vmatmul.mubr.msk.bf16.gmra.mrb[16].mxu1 %vm752_vm3, %v5107_v58  ;;  %5997 = vmatpush3.bf16.msra.mxu0 %v4166_v54  ;;  %v1353_v57 = vrot.slane %v6424_v62, 5  ;;  %v7232_v58 = vsel %vm6803_vm7, %v1334_v25, %v1335_v28  ;;  %v5136_v54 = vrot.slane %v1264_v31, 9  ;;  %v1356_v28 = vrot.slane %v6426_v40, 5 }
  0xb7   : > { %5814 = vmatprep.mubr.msk.bf16.mxu1 %vm752_vm3, %v5108_v61  ;;  %5968 = vmatprep.mubr.msk.bf16.mxu0 %vm752_vm3, %v6370_v11  ;;  %v6374_v61 = vld [vmem:[%s6551_s27 + $0x48] sm:$0xff]   ;;  %v6425_v11 = vld [vmem:[%s6551_s27 + $0x58] sm:$0xf]  ;;  %v1367_v62 = vrot.slane %v6428_v15, 5  ;;  %v5462_v15 = vld [vmem:[%s6551_s27 + $0x34] sm:$0xf] }
  0xb8   : > { %6331 = vmatprep.subr.msk.bf16.mxu0 %vm801_vm0, %v7182_v26  ;;  %v1360_v16 = vrot.slane %v6425_v11, 5  ;;  %v1355_v31 = vrot.slane %v1353_v57, 4  ;;  %v7262_v47 = vsel %vm6803_vm7, %v5136_v54, %v1353_v57  ;;  %v5457_v57 = vld [vmem:[%s6551_s27 + $0x20] sm:$0x1]  ;;  %v5461_v54 = vld [vmem:[%s6551_s27 + $0x30] sm:$0xf] }
  0xb9   : > { %v5138_v11 = vrot.slane %v1266_v50, 9  ;;  %v3735_v50 = vshll.u32 %v5461_v54, 16  ;;  %v3703_v25 = vshll.u32 %v5457_v57, 16  ;;  %v3741_v36 = vshll.u32 %v5462_v15, 16 }
  0xba   : > { %v7273_v60 = vsel %vm6803_vm7, %v5137_v41, %v1360_v16  ;;  %v7289_v41 = vsel %vm6803_vm7, %v1355_v31, %v1356_v28  ;;  %v1369_v31 = vrot.slane %v1367_v62, 4  ;;  %v3732_v28 = vshrl.u32 %v5461_v54, 16 }
  0xbb   : > { %v7331_v35 = vrot.slane %v3741_v36, 5 }
  0xbd   : > { %5969 = vmatmul.mubr.msk.bf16.gmra.mrb[4].mxu0 %vm752_vm3, %v6372_v37  ;;  %v1362_v37 = vrot.slane %v1360_v16, 4  ;;  %v6429_v16 = vld [vmem:[%s6551_s27 + $0x68] sm:$0x1] }
  0xbe   : > { %5815 = vmatmul.mubr.msk.bf16.gmra.mrb[20].mxu1 %vm752_vm3, %v5109_v6  ;;  %5972 = vmatprep.mubr.msk.bf16.mxu0 %vm752_vm3, %v6374_v61  ;;  %v3689_v6 = vrot.slane %v3687_v8, 5  ;;  %v6376_v61 = vld [vmem:[%s6551_s27 + $0x54] sm:$0xff]   ;;  %v1370_v40 = vrot.slane %v6429_v16, 5  ;;  %v3717_v8 = vshll.u32 %v5459_v39, 16  ;;  %v3700_v16 = vor.u32 %v3699_v12, %v7283_v7 }
  0xbf   : > { %5818 = vmatprep.mubr.msk.bf16.mxu1 %vm752_vm3, %v5110_v9  ;;  %v3708_v9 = vshrl.u32 %v5458_v24, 16  ;;  %v7298_v44 = vsel %vm6803_vm7, %v1362_v37, %v1363_v55  ;;  %v1377_v24 = vrot.slane %v6431_v17, 5  ;;  %v3745_v39 = vshrl.u32 %v5462_v15, 16 }
  0xc0   : > { %v3690_v10 = vor.u32 %v3689_v6, %v3686_v43  ;;  %v7304_v37 = vrot.slane %v3717_v8, 5  ;;  %v3723_v55 = vrot.slane %v3721_v18, 4  ;;  %v8368_v43 = vcombine.low %v6908_v52, %v6919_v46  ;;  %v6432_v8 = vld [vmem:[%s6551_s27 + $0x7c] sm:$0xf]  ;;  %v7340_v18 = vld [vmem:[%s6551_s27 + $0x38] sm:$0x1] }
  0xc1   : > { %v3710_v38 = vrot.slane %v3708_v9, 4  ;;  %v7313_v17 = vsel %vm6803_vm7, %v5138_v11, %v1367_v62  ;;  %v7317_v57 = vsel %vm6803_vm7, %v1369_v31, %v1370_v40  ;;  %v3734_v6 = vrot.slane %v3732_v28, 4  ;;  %8370 = vst [vmem:[#allocation6_spill] sm:$0xff] %v7340_v18 }
  0xc2   : > { %v3737_v12 = vrot.slane %v3735_v50, 5  ;;  %v8369_v52 = vcombine.low %v6940_v33, %v6945_v56  ;;  %v3691_v46 = vrot.slane %v3690_v10, 4  ;;  %v3701_v54 = vrot.slane %v3700_v16, 4  ;;  %v6380_v33 = vld [vmem:[%s6551_s27 + $0x6c] sm:$0xff]   ;;  %v1269_v16 = vld [vmem:[%s6551_s27 + $0x84] sm:$0xe] }
  0xc3   : > { %v3727_v62 = vshll.u32 %v5460_v20, 16  ;;  %v7325_v11 = vsel %vm6803_vm7, %v5139_v5, %v1374_v30  ;;  %v7329_v40 = vsel %vm6803_vm7, %v1376_v48, %v1377_v24  ;;  %v3747_v9 = vrot.slane %v3745_v39, 4  ;;  %v6381_v48 = vld [vmem:[%s6551_s27 + $0x78] sm:$0xff]  }
  0xc4   : > { %v3714_v10 = vor.u32 %v3713_v27, %v3710_v38  ;;  %v3724_v20 = vor.u32 %v3723_v55, %v7304_v37  ;;  %v1381_v30 = vrot.slane %v6432_v8, 5  ;;  %v3738_v38 = vor.u32 %v3737_v12, %v3734_v6  ;;  %v5464_v5 = vld [vmem:[%s6551_s27 + $0x3c] sm:$0xf] }
  0xc5   : > { %5973 = vmatmul.mubr.msk.bf16.gmra.mrb[8].mxu0 %vm752_vm3, %v6376_v61  ;;  %v3705_v61 = vrot.slane %v3703_v25, 5  ;;  %v1268_v25 = vld [vmem:[%s6551_s27 + $0x78] sm:$0xe]  ;;  %v7356_v50 = vrot.slane %v3727_v62, 5  ;;  %v3748_v39 = vor.u32 %v3747_v9, %v7331_v35  ;;  %v3751_v55 = vshll.u32 %v7340_v18, 16 }
  0xc6   : > { %5819 = vmatmul.mubr.msk.bf16.gmra.mrb[24].mxu1 %vm752_vm3, %v8368_v43  ;;  %5976 = vmatprep.mubr.msk.bf16.mxu0 %vm752_vm3, %v6378_v21  ;;  %v3696_v21 = vsel %vm6577_vm4, %v3691_v46, %v7283_v7  ;;  %v5140_v24 = vrot.slane %v1268_v25, 9  ;;  %v6433_v43 = vld [vmem:[%s6551_s27 + $0x88] sm:$0xf]  ;;  %v7364_v7 = vld [vmem:[%s6551_s27 + $0x40] sm:$0xf]  ;;  %v3715_v12 = vrot.slane %v3714_v10, 4  ;;  %v8372_v62 = vcombine.low %v6960_v14, %v6969_v42 }
  0xc7   : > { %5822 = vmatprep.mubr.msk.bf16.mxu1 %vm752_vm3, %v8369_v52  ;;  %v3706_v31 = vsel %vm6577_vm4, %v3701_v54, %v3705_v61  ;;  %v1388_v6 = vrot.slane %v6433_v43, 5  ;;  %8371 = vst [vmem:[#allocation7_spill] sm:$0xff] %v7364_v7  ;;  %v3725_v52 = vrot.slane %v3724_v20, 4  ;;  %v1383_v46 = vrot.slane %v1381_v30, 4  ;;  %v6434_v54 = vld [vmem:[%s6551_s27 + $0x80] sm:$0x1] }
  0xc8   : > { %v1384_v61 = vrot.slane %v6434_v54, 5  ;;  %v3739_v9 = vrot.slane %v3738_v38, 4  ;;  %v5141_v25 = vrot.slane %v1269_v16, 9  ;;  %v3756_v8 = vshrl.u32 %v5464_v5, 16  ;;  %v6382_v10 = vld [vmem:[%s6551_s27 + $0x84] sm:$0xff]  }
  0xc9   : > { %v3759_v43 = vshll.u32 %v5464_v5, 16  ;;  %v7378_v20 = vcombine.low %v3696_v21, %v3706_v31  ;;  %v7382_v14 = vsel %vm801_vm0, %v7182_v26, 0  ;;  %v3769_v38 = vshrl.u32 %v7364_v7, 16  ;;  %v6383_v21 = vld [vmem:[%s6551_s27 + $0x90] sm:$0xff]   ;;  %v6439_v18 = vld [vmem:[%s6551_s27 + $0xa0] sm:$0xf] }
  0xca   : > { %v3749_v16 = vrot.slane %v3748_v39, 4  ;;  %v3753_v5 = vrot.slane %v3751_v55, 5  ;;  %v1390_v54 = vrot.slane %v1388_v6, 4  ;;  %v3720_v31 = vsel %vm6577_vm4, %v3715_v12, %v7304_v37 }
  0xcb   : > { %v3730_v26 = vsel %vm6577_vm4, %v3725_v52, %v7356_v50  ;;  %v7397_v39 = vsel %vm6803_vm7, %v5140_v24, %v1381_v30  ;;  %v7401_v55 = vsel %vm6803_vm7, %v1383_v46, %v1384_v61  ;;  %v3744_v37 = vsel %vm6577_vm4, %v3739_v9, %v7331_v35  ;;  %v5470_v30 = vld [vmem:[%s6551_s27 + $0x54] sm:$0xf]  ;;  %v7418_v24 = vld [vmem:[%s6551_s27 + $0x58] sm:$0xf]  ;;  %v7423_v61 = vld [vmem:[%s6551_s27 + $0x90] sm:$0xe] }
  0xcc   : > { %v7414_v12 = vsel %vm6803_vm7, %v5141_v25, %v1388_v6  ;;  %v3758_v50 = vrot.slane %v3756_v8, 4  ;;  %v3761_v52 = vrot.slane %v3759_v43, 5  ;;  %v3771_v46 = vrot.slane %v3769_v38, 4 }
  0xcd   : > { %5977 = vmatmul.mubr.msk.bf16.gmra.mrb[12].mxu0 %vm752_vm3, %v6380_v33  ;;  %v8373_v33 = vcombine.low %v7167_v0, %v7186_v23  ;;  %v6435_v0 = vld [vmem:[%s6551_s27 + $0x8c] sm:$0x1]  ;;  %v3754_v36 = vsel %vm6577_vm4, %v3749_v16, %v3753_v5  ;;  %v3804_v25 = vshrl.u32 %v5470_v30, 16  ;;  %v3807_v8 = vshll.u32 %v5470_v30, 16 }
  0xce   : > { %5823 = vmatmul.mubr.msk.bf16.gmra.mrb[28].mxu1 %vm752_vm3, %v8372_v62  ;;  %5980 = vmatprep.mubr.msk.bf16.mxu0 %vm752_vm3, %v6381_v48  ;;  %v3765_v48 = vshll.u32 %v7364_v7, 16  ;;  %v1391_v23 = vrot.slane %v6435_v0, 5  ;;  %v5467_v62 = vld [vmem:[%s6551_s27 + $0x48] sm:$0xf]  ;;  %v7407_v0 = vld [vmem:[%s6551_s27 + $0x4c] sm:$0xf]  ;;  %v8375_v38 = vcombine.low %v7171_v29, %v7175_v53  ;;  %v7441_v16 = vcombine.low %v3720_v31, %v3730_v26 }
  0xcf   : > { %5828 = vmatprep.mubr.msk.bf16.mxu1 %vm752_vm3, %v8373_v33  ;;  %v7404_v33 = vld [vmem:[%s6551_s27 + $0x44] sm:$0x1]  ;;  %v3780_v27 = vshrl.u32 %v5467_v62, 16  ;;  %v3783_v15 = vshll.u32 %v5467_v62, 16  ;;  %v3789_v6 = vshll.u32 %v7407_v0, 16  ;;  %v3793_v9 = vshrl.u32 %v7407_v0, 16 }
  0xd0   : > { %8374 = vst [vmem:[#allocation8_spill] sm:$0xff] %v7404_v33  ;;  %v7420_v28 = vrot.slane %v3765_v48, 5  ;;  %v7429_v35 = vsel %vm6803_vm7, %v1390_v54, %v1391_v23  ;;  %v3813_v43 = vshll.u32 %v7418_v24, 16  ;;  %v3817_v48 = vshrl.u32 %v7418_v24, 16  ;;  %v5473_v31 = vld [vmem:[%s6551_s27 + $0x60] sm:$0xf] }
  0xd1   : > { %v3775_v5 = vshll.u32 %v7404_v33, 16  ;;  %v5142_v54 = vrot.slane %v7423_v61, 9  ;;  %v8376_v23 = vcombine.low %v7212_v34, %v7228_v4  ;;  %v7452_v29 = vcombine.low %v3744_v37, %v3754_v36  ;;  %v6384_v26 = vld [vmem:[%s6551_s27 + $0x9c] sm:$0xff]   ;;  %v6385_v30 = vld [vmem:[%s6551_s27 + $0xa8] sm:$0xff]  }
  0xd2   : > { %v3762_v53 = vor.u32 %v3761_v52, %v3758_v50  ;;  %v3782_v62 = vrot.slane %v3780_v27, 4  ;;  %v7463_v34 = vrot.slane %v3789_v6, 5  ;;  %v3795_v4 = vrot.slane %v3793_v9, 4  ;;  %v6436_v36 = vld [vmem:[%s8344_s1 + $0x8] sm:$0x3] }
  0xd3   : > { %v3806_v27 = vrot.slane %v3804_v25, 4  ;;  %v3809_v37 = vrot.slane %v3807_v8, 5  ;;  %v7472_v50 = vrot.slane %v3813_v43, 5  ;;  %v3819_v52 = vrot.slane %v3817_v48, 4  ;;  %v6437_v6 = vld [vmem:[%s6551_s27 + $0x94] sm:$0xf] }
  0xd4   : > { %v7478_v9 = vld [vmem:[%s6551_s27 + $0x64] sm:$0xf]  ;;  %v3828_v61 = vshrl.u32 %v5473_v31, 16  ;;  %v7480_v22 = vrot.slane %v3762_v53, 4  ;;  %v1402_v25 = vrot.slane %v6439_v18, 5  ;;  %v3796_v43 = vor.u32 %v3795_v4, %v7463_v34 }
  0xd5   : > { %5981 = vmatmul.mubr.msk.bf16.gmra.mrb[16].mxu0 %vm752_vm3, %v6382_v10  ;;  %8377 = vst [vmem:[#allocation9_spill] sm:$0xff] %v7478_v9  ;;  %v3831_v10 = vshll.u32 %v5473_v31, 16  ;;  %v3810_v31 = vor.u32 %v3809_v37, %v3806_v27  ;;  %v3820_v53 = vor.u32 %v3819_v52, %v7472_v50  ;;  %v8378_v18 = vcombine.low %v7219_v19, %v7232_v58  ;;  %v6386_v37 = vld [vmem:[%s6551_s27 + $0xb4] sm:$0xff]  }
  0xd6   : > { %5829 = vmatmul.mubr.msk.bf16.vlgmr.msra.gmra.mrb[0].mxu1 %vm752_vm3, %v8375_v38  ;;  %5984 = vmatprep.mubr.msk.bf16.mxu0 %vm752_vm3, %v6383_v21  ;;  %v3785_v21 = vrot.slane %v3783_v15, 5  ;;  %v7461_v38 = vld [vmem:[%s6551_s27 + $0x50] sm:$0x1]  ;;  %v7470_v15 = vld [vmem:[%s6551_s27 + $0x5c] sm:$0x1]  ;;  %v8379_v27 = vcombine.low %v7237_v2, %v7241_v1  ;;  %v1404_v52 = vrot.slane %v1402_v25, 4 }
  0xd7   : > { %5861 = vmatpush3.bf16.msra.mxu1 %v7208_v49  ;;  %5832 = vmatprep.mubr.msk.bf16.mxu1 %vm752_vm3, %v8376_v23  ;;  %v3772_v49 = vor.u32 %v3771_v46, %v7420_v28  ;;  %v7474_v46 = vrot.slane %v3775_v5, 5  ;;  %v1395_v23 = vrot.slane %v6437_v6, 5  ;;  %v3799_v48 = vshll.u32 %v7461_v38, 16  ;;  %v1271_v5 = vld [vmem:[%s6551_s27 + $0x9c] sm:$0xe] }
  0xd8   : > { %6327 = vmatprep.subr.msk.bf16.mxu1 %vm801_vm0, %v6436_v36  ;;  %v6438_v36 = vld [vmem:[%s6551_s27 + $0x98] sm:$0x1]  ;;  %v3786_v7 = vor.u32 %v3785_v21, %v3782_v62  ;;  %v3823_v6 = vshll.u32 %v7470_v15, 16  ;;  %v3841_v62 = vshrl.u32 %v7478_v9, 16  ;;  %v3833_v4 = vrot.slane %v3831_v10, 5 }
  0xd9   : > { %v1398_v33 = vrot.slane %v6438_v36, 5  ;;  %v3773_v8 = vrot.slane %v3772_v49, 4  ;;  %v3837_v36 = vshll.u32 %v7478_v9, 16  ;;  %v7499_v21 = vsel %vm6803_vm7, %v5142_v54, %v1395_v23  ;;  %v7510_v2 = vld [vmem:[%s6551_s27 + $0x68] sm:$0x1] }
  0xda   : > { %v3830_v49 = vrot.slane %v3828_v61, 4  ;;  %v3787_v19 = vrot.slane %v3786_v7, 4  ;;  %v5143_v58 = vrot.slane %v1271_v5, 9  ;;  %v3797_v3 = vrot.slane %v3796_v43, 4  ;;  %8380 = vst [vmem:[#allocation10_spill] sm:$0xff] %v7510_v2  ;;  %v6387_v5 = vld [vmem:[%s6551_s27 + $0xc0] sm:$0xff]  }
  0xdb   : > { %v3801_v54 = vrot.slane %v3799_v48, 5  ;;  %v3825_v63 = vrot.slane %v3823_v6, 5  ;;  %v1409_v61 = vrot.slane %v6945_v56, 5  ;;  %v3811_v10 = vrot.slane %v3810_v31, 4  ;;  %v1273_v31 = vld [vmem:[%s6551_s27 + $0xb4] sm:$0xe] }
  0xdc   : > { %v3821_v51 = vrot.slane %v3820_v53, 4  ;;  %v7512_v1 = vrot.slane %v3837_v36, 5  ;;  %v3843_v7 = vrot.slane %v3841_v62, 4  ;;  %v3768_v43 = vsel %vm6577_vm4, %v7480_v22, %v7420_v28  ;;  %v6441_v62 = vld [vmem:[%s6551_s27 + $0xb0] sm:$0x1] }
  0xdd   : > { %5985 = vmatmul.mubr.msk.bf16.gmra.mrb[20].mxu0 %vm752_vm3, %v6384_v26  ;;  %v1397_v26 = vrot.slane %v1395_v23, 4  ;;  %v1272_v23 = vld [vmem:[%s6551_s27 + $0xa8] sm:$0xe]  ;;  %v3778_v48 = vsel %vm6577_vm4, %v3773_v8, %v7474_v46  ;;  %v3834_v6 = vor.u32 %v3833_v4, %v3830_v49  ;;  %v3792_v53 = vsel %vm6577_vm4, %v3787_v19, %v7463_v34  ;;  %v5476_v46 = vld [vmem:[%s6551_s27 + $0x6c] sm:$0xf] }
  0xde   : > { %5833 = vmatmul.mubr.msk.bf16.gmra.mrb[4].mxu1 %vm752_vm3, %v8378_v18  ;;  %5988 = vmatprep.mubr.msk.bf16.mxu0 %vm752_vm3, %v6385_v30  ;;  %v6440_v18 = vld [vmem:[%s6551_s27 + $0xa4] sm:$0x1]  ;;  %v7532_v36 = vsel %vm6803_vm7, %v5143_v58, %v1402_v25  ;;  %v5144_v28 = vrot.slane %v1272_v23, 9  ;;  %v1411_v8 = vrot.slane %v1409_v61, 4  ;;  %v3847_v49 = vshll.u32 %v7510_v2, 16 }
  0xdf   : > { %5836 = vmatprep.mubr.msk.bf16.mxu1 %vm752_vm3, %v8379_v27  ;;  %v1405_v30 = vrot.slane %v6440_v18, 5  ;;  %v7524_v56 = vsel %vm6803_vm7, %v1397_v26, %v1398_v33  ;;  %v3802_v33 = vsel %vm6577_vm4, %v3797_v3, %v3801_v54  ;;  %v1412_v26 = vrot.slane %v6441_v62, 5  ;;  %v5479_v18 = vld [vmem:[%s6551_s27 + $0x78] sm:$0xf]  ;;  %v7587_v54 = vld [vmem:[%s6551_s27 + $0xbc] sm:$0x1] }
  0xe0   : > { %v3816_v34 = vsel %vm6577_vm4, %v3811_v10, %v7472_v50  ;;  %v3826_v25 = vsel %vm6577_vm4, %v3821_v51, %v3825_v63  ;;  %v3844_v4 = vor.u32 %v3843_v7, %v7512_v1  ;;  %v5145_v27 = vrot.slane %v1273_v31, 9  ;;  %v7561_v51 = vld [vmem:[%s6551_s27 + $0x70] sm:$0xf]  ;;  %v7591_v10 = vld [vmem:[%s6551_s27 + $0x7c] sm:$0xf] }
  0xe1   : > { %v7536_v22 = vsel %vm6803_vm7, %v1404_v52, %v1405_v30  ;;  %v8382_v3 = vcombine.low %v7254_v45, %v7258_v59  ;;  %v7557_v19 = vrot.slane %v3834_v6, 4  ;;  %v1416_v50 = vrot.slane %v6969_v42, 5  ;;  %8383 = vst [vmem:[#allocation12_spill] sm:$0xff] %v7561_v51  ;;  %8385 = vst [vmem:[#allocation13_spill] sm:$0xff] %v7591_v10  ;;  %v5482_v7 = vld [vmem:[%s6551_s27 + $0x84] sm:$0xf] }
  0xe2   : > { %8381 = vst [vmem:[#allocation11_spill] sm:$0xff] %v7536_v22  ;;  %v3852_v63 = vshrl.u32 %v5476_v46, 16  ;;  %v8384_v45 = vcombine.low %v7262_v47, %v7289_v41  ;;  %v7569_v58 = vcombine.low %v3792_v53, %v3802_v33  ;;  %v7575_v42 = vsel %vm6803_vm7, %v5144_v28, %v1409_v61  ;;  %v6388_v61 = vld [vmem:[%s6551_s27 + $0xcc] sm:$0xff]   ;;  %v7603_v31 = vld [vmem:[%s6551_s27 + $0x88] sm:$0xf] }
  0xe3   : > { %v7578_v30 = vcombine.low %v3816_v34, %v3826_v25  ;;  %v7582_v47 = vsel %vm6803_vm7, %v1411_v8, %v1412_v26  ;;  %v7584_v41 = vrot.slane %v3847_v49, 5  ;;  %v3861_v6 = vshll.u32 %v7561_v51, 16  ;;  %8386 = vst [vmem:[#allocation14_spill] sm:$0xff] %v7603_v31  ;;  %v5485_v62 = vld [vmem:[%s6551_s27 + $0x90] sm:$0xf] }
  0xe4   : > { %v7609_v28 = vrot.slane %v1416_v50, 4  ;;  %v7611_v33 = vrot.slane %v3852_v63, 4  ;;  %v3865_v8 = vshrl.u32 %v7561_v51, 16  ;;  %v3876_v26 = vshrl.u32 %v5479_v18, 16  ;;  %v7618_v25 = vld [vmem:[%s6551_s27 + $0x94] sm:$0xf] }
  0xe5   : > { %5989 = vmatmul.mubr.msk.bf16.gmra.mrb[24].mxu0 %vm752_vm3, %v6386_v37  ;;  %v7555_v37 = vcombine.low %v3768_v43, %v3778_v48  ;;  %v7599_v43 = vsel %vm6803_vm7, %v5145_v27, %v1416_v50  ;;  %v3855_v48 = vshll.u32 %v5476_v46, 16  ;;  %v3879_v49 = vshll.u32 %v5479_v18, 16  ;;  %8387 = vst [vmem:[#allocation15_spill] sm:$0xff] %v7618_v25  ;;  %v7656_v2 = vld [vmem:[%s6551_s27 + $0x8c] sm:$0x1] }
  0xe6   : > { %5837 = vmatmul.mubr.msk.bf16.gmra.mrb[8].mxu1 %vm752_vm3, %v8382_v3  ;;  %5992 = vmatprep.mubr.msk.bf16.mxu0 %vm752_vm3, %v6387_v5  ;;  %v7595_v5 = vrot.slane %v3844_v4, 4  ;;  %v3885_v46 = vshll.u32 %v7591_v10, 16  ;;  %v3889_v34 = vshrl.u32 %v7591_v10, 16  ;;  %v3900_v4 = vshrl.u32 %v5482_v7, 16 }
  0xe7   : > { %5840 = vmatprep.mubr.msk.bf16.mxu1 %vm752_vm3, %v8384_v45  ;;  %v3903_v27 = vshll.u32 %v5482_v7, 16  ;;  %v3909_v3 = vshll.u32 %v7603_v31, 16  ;;  %v3913_v50 = vshrl.u32 %v7603_v31, 16  ;;  %v7628_v45 = vld [vmem:[%s6551_s27 + $0x74] sm:$0x1]  ;;  %v3857_v18 = vrot.slane %v3855_v48, 5 }
  0xe8   : > { %v3924_v52 = vshrl.u32 %v5485_v62, 16  ;;  %v3927_v53 = vshll.u32 %v5485_v62, 16  ;;  %v8388_v7 = vcombine.low %v7273_v60, %v7298_v44  ;;  %v3867_v59 = vrot.slane %v3865_v8, 4  ;;  %v5488_v48 = vld [vmem:[%s6551_s27 + $0x9c] sm:$0xf] }
  0xe9   : > { %v3933_v63 = vshll.u32 %v7618_v25, 16  ;;  %v3937_v23 = vshrl.u32 %v7618_v25, 16  ;;  %v8389_v62 = vcombine.low %v7313_v17, %v7317_v57  ;;  %v7646_v44 = vld [vmem:[%s6551_s27 + $0x80] sm:$0x1]  ;;  %v3878_v60 = vrot.slane %v3876_v26, 4 }
  0xea   : > { %8390 = vst [vmem:[#allocation16_spill] sm:$0xff] %v7646_v44  ;;  %v3902_v31 = vrot.slane %v3900_v4, 4  ;;  %v3905_v8 = vrot.slane %v3903_v27, 5  ;;  %v7650_v10 = vrot.slane %v3909_v3, 5  ;;  %v3915_v51 = vrot.slane %v3913_v50, 4 }
  0xeb   : > { %v7653_v25 = vld [vmem:[%s6551_s27 + $0xa0] sm:$0xf]  ;;  %v3926_v17 = vrot.slane %v3924_v52, 4  ;;  %v3929_v57 = vrot.slane %v3927_v53, 5  ;;  %v3951_v9 = vshll.u32 %v5488_v48, 16  ;;  %v3858_v26 = vor.u32 %v3857_v18, %v7611_v33 }
  0xec   : > { %v3895_v27 = vshll.u32 %v7646_v44, 16  ;;  %v7665_v3 = vld [vmem:[%s6551_s27 + $0x98] sm:$0x1]  ;;  %v3957_v50 = vshll.u32 %v7653_v25, 16  ;;  %v3961_v52 = vshrl.u32 %v7653_v25, 16  ;;  %v3906_v22 = vor.u32 %v3905_v8, %v3902_v31 }
  0xed   : > { %5993 = vmatmul.mubr.msk.bf16.gmra.mrb[28].mxu0 %vm752_vm3, %v6388_v61  ;;  %v7636_v61 = vrot.slane %v3861_v6, 5  ;;  %v3891_v6 = vrot.slane %v3889_v34, 4  ;;  %v3939_v34 = vrot.slane %v3937_v23, 4  ;;  %v3919_v33 = vshll.u32 %v7656_v2, 16 }
  0xee   : > { %5841 = vmatmul.mubr.msk.bf16.gmra.mrb[12].mxu1 %vm752_vm3, %v8388_v7  ;;  %5998 = vmatprep.mubr.msk.bf16.mxu0 %vm752_vm3, %v7378_v20  ;;  %v3881_v7 = vrot.slane %v3879_v49, 5  ;;  %v7648_v20 = vrot.slane %v3885_v46, 5  ;;  %v3871_v49 = vshll.u32 %v7628_v45, 16  ;;  %v7660_v46 = vrot.slane %v3933_v63, 5 }
  0xef   : > { %5844 = vmatprep.mubr.msk.bf16.mxu1 %vm752_vm3, %v8389_v62  ;;  %v3948_v62 = vshrl.u32 %v5488_v48, 16  ;;  %v3868_v4 = vor.u32 %v3867_v59, %v7636_v61  ;;  %v3916_v23 = vor.u32 %v3915_v51, %v7650_v10  ;;  %v3930_v59 = vor.u32 %v3929_v57, %v3926_v17  ;;  %v7698_v57 = vld [vmem:[%s6551_s27 + $0xa4] sm:$0x1] }
  0xf0   : > { %v3882_v53 = vor.u32 %v3881_v7, %v3878_v60  ;;  %v3892_v48 = vor.u32 %v3891_v6, %v7648_v20  ;;  %v3953_v18 = vrot.slane %v3951_v9, 5  ;;  %v8391_v44 = vcombine.low %v7325_v11, %v7329_v40 }
  0xf1   : > { %v3950_v63 = vrot.slane %v3948_v62, 4  ;;  %v8392_v31 = vrot.slane %v7587_v54, 5  ;;  %v3873_v51 = vrot.slane %v3871_v49, 5  ;;  %v3940_v60 = vor.u32 %v3939_v34, %v7660_v46  ;;  %v7701_v34 = vld [vmem:[%s6551_s27 + $0xac] sm:$0xf] }
  0xf2   : > { %v3943_v9 = vshll.u32 %v7665_v3, 16  ;;  %v8393_v11 = vcombine.low %v7397_v39, %v7401_v55  ;;  %v3859_v40 = vrot.slane %v3858_v26, 4  ;;  %v7694_v54 = vrot.slane %v3957_v50, 5 }
  0xf3   : > { %v3883_v7 = vrot.slane %v3882_v53, 4  ;;  %v3893_v6 = vrot.slane %v3892_v48, 4  ;;  %v3897_v8 = vrot.slane %v3895_v27, 5  ;;  %v3921_v17 = vrot.slane %v3919_v33, 5  ;;  %v7711_v48 = vld [vmem:[%s6551_s27 + $0xb0] sm:$0x1] }
  0xf4   : > { %v3907_v39 = vrot.slane %v3906_v22, 4  ;;  %v3917_v55 = vrot.slane %v3916_v23, 4  ;;  %v3931_v62 = vrot.slane %v3930_v59, 4  ;;  %v3954_v49 = vor.u32 %v3953_v18, %v3950_v63 }
  0xf5   : > { %5999 = vmatmul.mubr.msk.bf16.vlgmr.msra.gmra.mrb[0].mxu0 %vm752_vm3, %v7441_v16  ;;  %v7684_v16 = vsel %vm6803_vm7, %v7609_v28, %v8392_v31  ;;  %v3963_v28 = vrot.slane %v3961_v52, 4  ;;  %v3945_v26 = vrot.slane %v3943_v9, 5  ;;  %v3864_v52 = vsel %vm6577_vm4, %v3859_v40, %v7636_v61 }
  0xf6   : > { %5845 = vmatmul.mubr.msk.bf16.gmra.mrb[16].mxu1 %vm752_vm3, %v8391_v44  ;;  %6031 = vmatpush3.bf16.msra.mxu0 %v7382_v14  ;;  %v3869_v14 = vrot.slane %v3868_v4, 4  ;;  %v5491_v44 = vld [vmem:[%s6551_s27 + $0xa8] sm:$0xf]  ;;  %v3967_v22 = vshll.u32 %v7698_v57, 16  ;;  %v3888_v33 = vsel %vm6577_vm4, %v3883_v7, %v7648_v20  ;;  %v3898_v23 = vsel %vm6577_vm4, %v3893_v6, %v3897_v8 }
  0xf7   : > { %5848 = vmatprep.mubr.msk.bf16.mxu1 %vm752_vm3, %v8393_v11  ;;  %6002 = vmatprep.mubr.msk.bf16.mxu0 %vm752_vm3, %v7452_v29  ;;  %v3941_v29 = vrot.slane %v3940_v60, 4  ;;  %v3972_v4 = vshrl.u32 %v5491_v44, 16  ;;  %v3975_v50 = vshll.u32 %v5491_v44, 16  ;;  %v3964_v53 = vor.u32 %v3963_v28, %v7694_v54  ;;  %v5540_v11 = vld [vmem:[%s6551_s27 + $0x48] sm:$0xe] }
  0xf8   : > { %v3874_v27 = vsel %vm6577_vm4, %v3869_v14, %v3873_v51  ;;  %v3981_v59 = vshll.u32 %v7701_v34, 16  ;;  %v3985_v61 = vshrl.u32 %v7701_v34, 16  ;;  %v3912_v63 = vsel %vm6577_vm4, %v3907_v39, %v7650_v10  ;;  %v7776_v39 = vld [vmem:[%s6551_s27 + $0xb8] sm:$0xf] }
  0xf9   : > { %v3922_v18 = vsel %vm6577_vm4, %v3917_v55, %v3921_v17  ;;  %v3936_v20 = vsel %vm6577_vm4, %v3931_v62, %v7660_v46  ;;  %v3955_v31 = vrot.slane %v3954_v49, 4  ;;  %v8394_v51 = vcombine.low %v7414_v12, %v7429_v35 }
  0xfa   : > { %v3974_v10 = vrot.slane %v3972_v4, 4  ;;  %v3977_v60 = vrot.slane %v3975_v50, 5  ;;  %v3991_v9 = vshll.u32 %v7711_v48, 16  ;;  %v8395_v46 = vcombine.low %v7499_v21, %v7524_v56  ;;  %v5494_v21 = vld [vmem:[%s6551_s27 + $0xb4] sm:$0xf] }
  0xfb   : > { %v5161_v12 = vcombine.low %v7575_v42, %v7582_v47  ;;  %v8396_v35 = vsel %vm6577_vm4, %v7595_v5, %v7584_v41  ;;  %v3965_v14 = vrot.slane %v3964_v53, 4  ;;  %v3969_v28 = vrot.slane %v3967_v22, 5  ;;  %v5542_v4 = vld [vmem:[%s6551_s27 + $0x60] sm:$0xe]  ;;  %v5543_v53 = vld [vmem:[%s6551_s27 + $0x6c] sm:$0xe] }
  0xfc   : > { %v5162_v56 = vcombine.low %v7599_v43, %v7684_v16  ;;  %v7759_v44 = vcombine.low %v3864_v52, %v3874_v27  ;;  %v7761_v42 = vrot.slane %v3981_v59, 5  ;;  %v3987_v47 = vrot.slane %v3985_v61, 4  ;;  %v8405_v16 = vld [vmem:[#allocation4_spill] sm:$0xff] }
  0xfd   : > { %6003 = vmatmul.mubr.msk.bf16.gmra.mrb[4].mxu0 %vm752_vm3, %v7555_v37  ;;  %v3946_v37 = vsel %vm6577_vm4, %v3941_v29, %v3945_v26  ;;  %v7763_v41 = vcombine.low %v3888_v33, %v3898_v23  ;;  %v7765_v5 = vcombine.low %v3912_v63, %v3922_v18  ;;  %v3960_v6 = vsel %vm6577_vm4, %v3955_v31, %v7694_v54  ;;  %v8398_v23 = vld [vmem:[#allocation11_spill] sm:$0xff]  ;;  %v5497_v63 = vld [vmem:[%s6551_s27 + $0xc0] sm:$0xf]  ;;  %v8400_v18 = vld [vmem:[#allocation9_spill] sm:$0xff] }
  0xfe   : > { %5849 = vmatmul.mubr.msk.bf16.gmra.mrb[20].mxu1 %vm752_vm3, %v8394_v51  ;;  %6006 = vmatprep.mubr.msk.bf16.mxu0 %vm752_vm3, %v7569_v58  ;;  %v8397_v58 = vsel %vm6577_vm4, %v7557_v19, %v7512_v1  ;;  %v7767_v7 = vcombine.low %v3936_v20, %v3946_v37  ;;  %v5556_v1 = vrot.slane %v5540_v11, 9  ;;  %v5541_v19 = vld [vmem:[%s6551_s27 + $0x54] sm:$0xe]  ;;  %v3978_v8 = vor.u32 %v3977_v60, %v3974_v10  ;;  %v8401_v31 = vld [vmem:[#allocation10_spill] sm:$0xff] }
  0xff   : > { %5852 = vmatprep.mubr.msk.bf16.mxu1 %vm752_vm3, %v8395_v46  ;;  %v5510_v40 = vcombine.low %v8397_v58, %v8396_v35  ;;  %v7773_v17 = vrot.slane %v3991_v9, 5  ;;  %v3996_v55 = vshrl.u32 %v5494_v21, 16  ;;  %v3970_v62 = vsel %vm6577_vm4, %v3965_v14, %v3969_v28  ;;  %v8402_v9 = vld [vmem:[#allocation12_spill] sm:$0xff]  ;;  %v7825_v35 = vld [vmem:[%s6551_s27 + $0xbc] sm:$0x1] }
 0x100   : > { %v3999_v49 = vshll.u32 %v5494_v21, 16  ;;  %v4455_v29 = vrot.slane %v7407_v0, 5  ;;  %v4458_v26 = vrot.slane %v7461_v38, 5  ;;  %v3988_v50 = vor.u32 %v3987_v47, %v7761_v42  ;;  %v7828_v58 = vld [vmem:[%s6551_s27 + $0xc4] sm:$0xf] }
 0x101   : > { %v5557_v52 = vrot.slane %v5541_v19, 9  ;;  %v4462_v54 = vrot.slane %v7418_v24, 5  ;;  %v4465_v27 = vrot.slane %v7470_v15, 5  ;;  %v4005_v22 = vshll.u32 %v7776_v39, 16  ;;  %v5544_v19 = vld [vmem:[%s6551_s27 + $0x78] sm:$0xe] }
 0x102   : > { %v4009_v33 = vshrl.u32 %v7776_v39, 16  ;;  %v7793_v0 = vsel %vm6803_vm7, %v5556_v1, %v4455_v29  ;;  %v4457_v38 = vrot.slane %v4455_v29, 4  ;;  %v8399_v59 = vcombine.low %v7532_v36, %v8398_v23  ;;  %v8403_v23 = vld [vmem:[#allocation13_spill] sm:$0xff] }
 0x103   : > { %v7800_v24 = vcombine.low %v3960_v6, %v3970_v62  ;;  %v7804_v15 = vsel %vm6803_vm7, %v5557_v52, %v4462_v54  ;;  %v5558_v61 = vrot.slane %v5542_v4, 9  ;;  %v4469_v20 = vrot.slane %v8400_v18, 5  ;;  %v6389_v6 = vld [vmem:[%s6551_s27 + $0xc] sm:$0xff]  }
 0x104   : > { %v7810_v36 = vsel %vm6803_vm7, %v4457_v38, %v4458_v26  ;;  %v4472_v51 = vrot.slane %v8401_v31, 5  ;;  %v5559_v37 = vrot.slane %v5543_v53, 9  ;;  %v4476_v11 = vrot.slane %v8402_v9, 5 }
 0x105   : > { %6007 = vmatmul.mubr.msk.bf16.gmra.mrb[8].mxu0 %vm752_vm3, %v7578_v30  ;;  %v4464_v30 = vrot.slane %v4462_v54, 4  ;;  %v5573_v10 = vcombine.low %v7793_v0, %v7810_v36  ;;  %v4479_v46 = vrot.slane %v7628_v45, 5  ;;  %v7834_v14 = vsel %vm6803_vm7, %v5558_v61, %v4469_v20 }
 0x106   : > { %5853 = vmatmul.mubr.msk.bf16.gmra.mrb[24].mxu1 %vm752_vm3, %v8399_v59  ;;  %6010 = vmatprep.mubr.msk.bf16.mxu0 %vm752_vm3, %v5510_v40  ;;  %v4471_v28 = vrot.slane %v4469_v20, 4  ;;  %v7836_v21 = vrot.slane %v3996_v55, 4  ;;  %v4020_v47 = vshrl.u32 %v5497_v63, 16  ;;  %v7840_v45 = vsel %vm6803_vm7, %v5559_v37, %v4476_v11  ;;  %v5271_v55 = vld [vmem:[%s6551_s27 + $0x78] sm:$0xf]  ;;  %v8404_v59 = vld [vmem:[#allocation16_spill] sm:$0xff] }
 0x107   : > { %5856 = vmatprep.mubr.msk.bf16.mxu1 %vm752_vm3, %v5161_v12  ;;  %v7818_v60 = vsel %vm6803_vm7, %v4464_v30, %v4465_v27  ;;  %v7822_v12 = vrot.slane %v3978_v8, 4  ;;  %v4478_v1 = vrot.slane %v4476_v11, 4  ;;  %v7844_v8 = vrot.slane %v3988_v50, 4 }
 0x108   : > { %v5574_v40 = vcombine.low %v7804_v15, %v7818_v60  ;;  %v7846_v62 = vrot.slane %v3999_v49, 5  ;;  %v4023_v29 = vshll.u32 %v5497_v63, 16  ;;  %v7850_v26 = vsel %vm6803_vm7, %v4471_v28, %v4472_v51  ;;  %v8407_v28 = vld [vmem:[#allocation14_spill] sm:$0xff] }
 0x109   : > { %v7853_v4 = vrot.slane %v4005_v22, 5  ;;  %v7855_v52 = vrot.slane %v4009_v33, 4  ;;  %v5575_v54 = vcombine.low %v7834_v14, %v7850_v26  ;;  %v7861_v27 = vsel %vm6803_vm7, %v4478_v1, %v4479_v46  ;;  %v5545_v33 = vld [vmem:[%s6551_s27 + $0x84] sm:$0xe]  ;;  %v6390_v1 = vld [vmem:[%s6551_s27 + $0x18] sm:$0xff]  }
 0x10a   : > { %v4015_v49 = vshll.u32 %v7825_v35, 16  ;;  %v4029_v50 = vshll.u32 %v7828_v58, 16  ;;  %v5576_v53 = vcombine.low %v7840_v45, %v7861_v27  ;;  %v5560_v22 = vrot.slane %v5544_v19, 9  ;;  %v6452_v60 = vld [vmem:[%s6551_s27 + $0xa0] sm:$0xf] }
 0x10b   : > { %v4022_v38 = vrot.slane %v4020_v47, 4  ;;  %v4486_v30 = vrot.slane %v8404_v59, 5  ;;  %v2342_v61 = vshrl.u32 %v5271_v55, 16  ;;  %v4025_v63 = vrot.slane %v4023_v29, 5  ;;  %v5500_v29 = vld [vmem:[%s6551_s27 + $0xcc] sm:$0xf] }
 0x10c   : > { %v4033_v18 = vshrl.u32 %v7828_v58, 16  ;;  %v2345_v43 = vshll.u32 %v5271_v55, 16  ;;  %v5561_v37 = vrot.slane %v5545_v33, 9  ;;  %v3984_v9 = vsel %vm6577_vm4, %v7822_v12, %v7761_v42  ;;  %v7904_v55 = vld [vmem:[%s6551_s27 + $0xd0] sm:$0xf] }
 0x10d   : > { %6011 = vmatmul.mubr.msk.bf16.gmra.mrb[12].mxu0 %vm752_vm3, %v7759_v44  ;;  %v4483_v44 = vrot.slane %v8403_v23, 5  ;;  %v2344_v51 = vrot.slane %v2342_v61, 4  ;;  %v4002_v11 = vor.u32 %v7846_v62, %v7836_v21  ;;  %v4490_v47 = vrot.slane %v8407_v28, 5  ;;  %v6391_v21 = vld [vmem:[%s6551_s27 + $0x24] sm:$0xff]   ;;  %v6456_v27 = vld [vmem:[%s6551_s27 + $0xac] sm:$0xf] }
 0x10e   : > { %5857 = vmatmul.mubr.msk.bf16.gmra.mrb[28].mxu1 %vm752_vm3, %v5162_v56  ;;  %6014 = vmatprep.mubr.msk.bf16.mxu0 %vm752_vm3, %v7763_v41  ;;  %v8406_v56 = vld [vmem:[#allocation5_spill] sm:$0xff]  ;;  %v2347_v46 = vrot.slane %v2345_v43, 5  ;;  %v3994_v19 = vsel %vm6577_vm4, %v7844_v8, %v7773_v17  ;;  %v4493_v12 = vrot.slane %v7656_v2, 5  ;;  %v7912_v62 = vrot.slane %v4029_v50, 5  ;;  %v5546_v8 = vld [vmem:[%s6551_s27 + $0x90] sm:$0xe] }
 0x10f   : > { %5862 = vmatprep.mubr.msk.bf16.mxu1 %vm752_vm3, %v6389_v6  ;;  %v2364_v41 = vsel %vm6577_vm4, %v8406_v56, %v8405_v16  ;;  %v7886_v20 = vsel %vm6803_vm7, %v5560_v22, %v4483_v44  ;;  %v4485_v31 = vrot.slane %v4483_v44, 4  ;;  %v4012_v6 = vor.u32 %v7855_v52, %v7853_v4  ;;  %v7918_v52 = vld [vmem:[%s6551_s27 + $0xc8] sm:$0x1]  ;;  %v8409_v16 = vld [vmem:[#allocation2_spill] sm:$0xff] }
 0x110   : > { %v4035_v22 = vrot.slane %v4033_v18, 4  ;;  %v2348_v17 = vor.u32 %v2347_v46, %v2344_v51  ;;  %v4017_v23 = vrot.slane %v4015_v49, 5  ;;  %v4026_v44 = vor.u32 %v4025_v63, %v4022_v38  ;;  %v8410_v51 = vld [vmem:[#allocation3_spill] sm:$0xff] }
 0x111   : > { %v7908_v42 = vsel %vm6803_vm7, %v4485_v31, %v4486_v30  ;;  %v7922_v59 = vsel %vm6803_vm7, %v5561_v37, %v4490_v47  ;;  %v4492_v30 = vrot.slane %v4490_v47, 4  ;;  %v4044_v2 = vshrl.u32 %v5500_v29, 16 }
 0x112   : > { %v5577_v33 = vcombine.low %v7886_v20, %v7908_v42  ;;  %v4047_v50 = vshll.u32 %v5500_v29, 16  ;;  %v4053_v61 = vshll.u32 %v7904_v55, 16  ;;  %v2349_v18 = vrot.slane %v2348_v17, 4  ;;  %v6392_v29 = vld [vmem:[%s6551_s27 + $0x30] sm:$0xff]  }
 0x113   : > { %v4057_v49 = vshrl.u32 %v7904_v55, 16  ;;  %v7933_v38 = vsel %vm6803_vm7, %v4492_v30, %v4493_v12  ;;  %v5562_v63 = vrot.slane %v5546_v8, 9  ;;  %v4036_v56 = vor.u32 %v4035_v22, %v7912_v62 }
 0x114   : > { %v4039_v31 = vshll.u32 %v7918_v52, 16  ;;  %v5578_v37 = vcombine.low %v7922_v59, %v7933_v38  ;;  %v5516_v46 = vcombine.low %v3984_v9, %v3994_v19  ;;  %v4003_v28 = vrot.slane %v4002_v11, 4  ;;  %v5547_v11 = vld [vmem:[%s6551_s27 + $0x9c] sm:$0xe] }
 0x115   : > { %6015 = vmatmul.mubr.msk.bf16.gmra.mrb[16].mxu0 %vm752_vm3, %v7765_v5  ;;  %v8408_v5 = vld [vmem:[#allocation15_spill] sm:$0xff]  ;;  %v4013_v47 = vrot.slane %v4012_v6, 4  ;;  %v4027_v12 = vrot.slane %v4026_v44, 4  ;;  %v4500_v8 = vrot.slane %v7665_v3, 5  ;;  %v4046_v30 = vrot.slane %v4044_v2, 4  ;;  %v6393_v19 = vld [vmem:[%s6551_s27 + $0x3c] sm:$0xff]  }
 0x116   : > { %5863 = vmatmul.mubr.msk.bf16.vlgmr.msra.gmra.mrb[0].mxu1 %vm752_vm3, %v6390_v1  ;;  %6018 = vmatprep.mubr.msk.bf16.mxu0 %vm752_vm3, %v7767_v7  ;;  %v4497_v43 = vrot.slane %v8408_v5, 5  ;;  %v2354_v7 = vsel %vm6577_vm4, %v2349_v18, %v8410_v51  ;;  %v4049_v18 = vrot.slane %v4047_v50, 5  ;;  %v7956_v5 = vrot.slane %v4053_v61, 5 }
 0x117   : > { %6065 = vmatpush3.bf16.msra.mxu1 %v8409_v16  ;;  %5866 = vmatprep.mubr.msk.bf16.mxu1 %vm752_vm3, %v6391_v21  ;;  %v7945_v1 = vcombine.low %v2354_v7, %v2364_v41  ;;  %v7949_v21 = vld [vmem:[%s6551_s27 + $0xd4] sm:$0x1]  ;;  %v4059_v9 = vrot.slane %v4057_v49, 4  ;;  %v4037_v41 = vrot.slane %v4036_v56, 4  ;;  %v4041_v6 = vrot.slane %v4039_v31, 5 }
 0x118   : > { %v7953_v22 = vsel %vm6803_vm7, %v5562_v63, %v4497_v43  ;;  %v4499_v17 = vrot.slane %v4497_v43, 4  ;;  %v4008_v63 = vsel %vm6577_vm4, %v4003_v28, %v7853_v4  ;;  %v4018_v2 = vsel %vm6577_vm4, %v4013_v47, %v4017_v23  ;;  %v6443_v16 = vld [vmem:[%s6551_s27 + $0x1c] sm:$0xf]  ;;  %v5548_v28 = vld [vmem:[%s6551_s27 + $0xa8] sm:$0xe] }
 0x119   : > { %v4063_v50 = vshll.u32 %v7949_v21, 16  ;;  %v5563_v61 = vrot.slane %v5547_v11, 9  ;;  %v4504_v49 = vrot.slane %v7653_v25, 5  ;;  %v4032_v4 = vsel %vm6577_vm4, %v4027_v12, %v7912_v62  ;;  %v5536_v62 = vld [vmem:[%s6551_s27 + $0x18] sm:$0xe]  ;;  %v6394_v47 = vld [vmem:[%s6551_s27 + $0x48] sm:$0xff]  }
 0x11a   : > { %v7962_v44 = vsel %vm6803_vm7, %v4499_v17, %v4500_v8  ;;  %v4060_v43 = vor.u32 %v4059_v9, %v7956_v5  ;;  %v4507_v23 = vrot.slane %v7698_v57, 5  ;;  %v4042_v25 = vsel %vm6577_vm4, %v4037_v41, %v4041_v6  ;;  %v6444_v11 = vld [vmem:[%s6551_s27 + $0x20] sm:$0x1] }
 0x11b   : > { %v5579_v3 = vcombine.low %v7953_v22, %v7962_v44  ;;  %v4427_v56 = vrot.slane %v6443_v16, 5  ;;  %v7988_v31 = vsel %vm6803_vm7, %v5563_v61, %v4504_v49  ;;  %v4506_v51 = vrot.slane %v4504_v49, 4  ;;  %v5549_v49 = vld [vmem:[%s6551_s27 + $0xb4] sm:$0xe] }
 0x11c   : > { %v5517_v7 = vcombine.low %v4008_v63, %v4018_v2  ;;  %v4061_v17 = vrot.slane %v4060_v43, 4  ;;  %v5564_v41 = vrot.slane %v5548_v28, 9  ;;  %v4511_v6 = vrot.slane %v7701_v34, 5  ;;  %v5537_v2 = vld [vmem:[%s6551_s27 + $0x24] sm:$0xe] }
 0x11d   : > { %6019 = vmatmul.mubr.msk.bf16.gmra.mrb[20].mxu0 %vm752_vm3, %v7800_v24  ;;  %v4050_v24 = vor.u32 %v4049_v18, %v4046_v30  ;;  %v7993_v57 = vsel %vm6803_vm7, %v4506_v51, %v4507_v23  ;;  %v6395_v30 = vld [vmem:[%s6551_s27 + $0x54] sm:$0xff]   ;;  %v5552_v18 = vrot.slane %v5536_v62, 9  ;;  %v4429_v9 = vrot.slane %v4427_v56, 4  ;;  %v6447_v28 = vld [vmem:[%s6551_s27 + $0x2c] sm:$0x1] }
 0x11e   : > { %5867 = vmatmul.mubr.msk.bf16.gmra.mrb[4].mxu1 %vm752_vm3, %v6392_v29  ;;  %6022 = vmatprep.mubr.msk.bf16.mxu0 %vm752_vm3, %v5516_v46  ;;  %v4065_v46 = vrot.slane %v4063_v50, 5  ;;  %v5518_v29 = vcombine.low %v4032_v4, %v4042_v25  ;;  %v5580_v8 = vcombine.low %v7988_v31, %v7993_v57  ;;  %v4514_v63 = vrot.slane %v7711_v48, 5  ;;  %v6445_v50 = vld [vmem:[%s6551_s27 + $0x28] sm:$0xf]  ;;  %v5538_v25 = vld [vmem:[%s6551_s27 + $0x30] sm:$0xe] }
 0x11f   : > { %5870 = vmatprep.mubr.msk.bf16.mxu1 %vm752_vm3, %v6393_v19  ;;  %v4051_v12 = vrot.slane %v4050_v24, 4  ;;  %v4430_v19 = vrot.slane %v6444_v11, 5  ;;  %v4434_v61 = vrot.slane %v6445_v50, 5  ;;  %v8016_v48 = vsel %vm6803_vm7, %v5564_v41, %v4511_v6  ;;  %v6397_v11 = vld [vmem:[%s6551_s27 + $0x6c] sm:$0xff]   ;;  %v8411_v41 = vld [vmem:[#allocation6_spill] sm:$0xff] }
 0x120   : > { %v4066_v34 = vsel %vm6577_vm4, %v4061_v17, %v4065_v46  ;;  %v4513_v24 = vrot.slane %v4511_v6, 4  ;;  %v4428_v43 = vsel %vm6803_vm7, %v5552_v18, %v4427_v56  ;;  %v5553_v51 = vrot.slane %v5537_v2, 9  ;;  %v5550_v50 = vld [vmem:[%s6551_s27 + $0xc0] sm:$0xe]  ;;  %v6461_v31 = vld [vmem:[%s6551_s27 + $0xc8] sm:$0x1] }
 0x121   : > { %v4056_v4 = vsel %vm6577_vm4, %v4051_v12, %v7956_v5  ;;  %v4431_v23 = vsel %vm6803_vm7, %v4429_v9, %v4430_v19  ;;  %v6446_v5 = vld [vmem:[%s6551_s27 + $0x34] sm:$0xf]  ;;  %v6396_v12 = vld [vmem:[%s6551_s27 + $0x60] sm:$0xff]   ;;  %v5554_v18 = vrot.slane %v5538_v25, 9  ;;  %v4521_v9 = vrot.slane %v7825_v35, 5 }
 0x122   : > { %v4441_v16 = vrot.slane %v6446_v5, 5  ;;  %v8027_v62 = vsel %vm6803_vm7, %v4513_v24, %v4514_v63  ;;  %v5519_v46 = vcombine.low %v4056_v4, %v4066_v34  ;;  %v5569_v17 = vcombine.low %v4428_v43, %v4431_v23  ;;  %v5539_v24 = vld [vmem:[%s6551_s27 + $0x3c] sm:$0xe] }
 0x123   : > { %v5581_v56 = vcombine.low %v8016_v48, %v8027_v62  ;;  %v4444_v6 = vrot.slane %v8411_v41, 5  ;;  %v4435_v35 = vsel %vm6803_vm7, %v5553_v51, %v4434_v61  ;;  %v5566_v5 = vrot.slane %v5550_v50, 9 }
 0x124   : > { %v4443_v19 = vrot.slane %v4441_v16, 4  ;;  %v4442_v23 = vsel %vm6803_vm7, %v5554_v18, %v4441_v16  ;;  %v4528_v51 = vrot.slane %v7918_v52, 5  ;;  %v2505_v57 = vshll.u32 %v6461_v31, 16 }
 0x125   : > { %6023 = vmatmul.mubr.msk.bf16.gmra.mrb[24].mxu0 %vm752_vm3, %v5517_v7  ;;  %v5565_v7 = vrot.slane %v5549_v49, 9 }
 0x126   : > { %5871 = vmatmul.mubr.msk.bf16.gmra.mrb[8].mxu1 %vm752_vm3, %v6394_v47  ;;  %6026 = vmatprep.mubr.msk.bf16.mxu0 %vm752_vm3, %v5518_v29  ;;  %v4437_v47 = vrot.slane %v6447_v28, 5  ;;  %v4518_v29 = vrot.slane %v7776_v39, 5  ;;  %v8412_v39 = vld [vmem:[#allocation7_spill] sm:$0xff]  ;;  %v4445_v25 = vsel %vm6803_vm7, %v4443_v19, %v4444_v6  ;;  %v5555_v28 = vrot.slane %v5539_v24, 9 }
 0x127   : > { %5874 = vmatprep.mubr.msk.bf16.mxu1 %vm752_vm3, %v6395_v30  ;;  %v4436_v30 = vrot.slane %v4434_v61, 4  ;;  %v4448_v49 = vrot.slane %v8412_v39, 5  ;;  %v4525_v61 = vrot.slane %v7828_v58, 5  ;;  %v6448_v39 = vld [vmem:[%s6551_s27 + $0x70] sm:$0xf]  ;;  %v4532_v24 = vrot.slane %v7904_v55, 5 }
 0x128   : > { %v8039_v63 = vsel %vm6803_vm7, %v5565_v7, %v4518_v29  ;;  %v4520_v2 = vrot.slane %v4518_v29, 4  ;;  %v5268_v7 = vld [vmem:[%s6551_s27 + $0x6c] sm:$0xf]  ;;  %v8413_v29 = vld [vmem:[#allocation8_spill] sm:$0xff] }
 0x129   : > { %v4438_v34 = vsel %vm6803_vm7, %v4436_v30, %v4437_v47  ;;  %v4450_v47 = vrot.slane %v4448_v49, 4  ;;  %v6398_v30 = vld [vmem:[%s6551_s27 + $0x78] sm:$0xff]   ;;  %v8070_v16 = vsel %vm6803_vm7, %v5566_v5, %v4525_v61  ;;  %v4527_v18 = vrot.slane %v4525_v61, 4 }
 0x12a   : > { %v8046_v4 = vsel %vm6803_vm7, %v4520_v2, %v4521_v9  ;;  %v5571_v9 = vcombine.low %v4442_v23, %v4445_v25  ;;  %v2318_v19 = vshrl.u32 %v5268_v7, 16  ;;  %v2321_v41 = vshll.u32 %v5268_v7, 16 }
 0x12b   : > { %v5582_v43 = vcombine.low %v8039_v63, %v8046_v4  ;;  %v8075_v58 = vsel %vm6803_vm7, %v4527_v18, %v4528_v51  ;;  %v4449_v6 = vsel %vm6803_vm7, %v5555_v28, %v4448_v49  ;;  %v4535_v49 = vrot.slane %v7949_v21, 5  ;;  %v6400_v51 = vld [vmem:[%s6551_s27 + $0x90] sm:$0xff]   ;;  %v6401_v21 = vld [vmem:[%s6551_s27 + $0x9c] sm:$0xff]  }
 0x12c   : > { %v5583_v50 = vcombine.low %v8070_v16, %v8075_v58  ;;  %v2320_v23 = vrot.slane %v2318_v19, 4  ;;  %v2323_v25 = vrot.slane %v2321_v41, 5  ;;  %v4534_v7 = vrot.slane %v4532_v24, 4 }
 0x12d   : > { %6027 = vmatmul.mubr.msk.bf16.gmra.mrb[28].mxu0 %vm752_vm3, %v5519_v46  ;;  %v5570_v46 = vcombine.low %v4435_v35, %v4438_v34  ;;  %v2327_v35 = vshll.u32 %v6448_v39, 16  ;;  %v2331_v34 = vshrl.u32 %v6448_v39, 16 }
 0x12e   : > { %5875 = vmatmul.mubr.msk.bf16.gmra.mrb[12].mxu1 %vm752_vm3, %v6396_v12  ;;  %6032 = vmatprep.mubr.msk.bf16.mxu0 %vm752_vm3, %v5569_v17  ;;  %v4451_v12 = vrot.slane %v8413_v29, 5  ;;  %v5551_v17 = vld [vmem:[%s6551_s27 + $0xcc] sm:$0xe]  ;;  %v8097_v55 = vsel %vm6803_vm7, %v4534_v7, %v4535_v49 }
 0x12f   : > { %5878 = vmatprep.mubr.msk.bf16.mxu1 %vm752_vm3, %v6397_v11  ;;  %v6399_v11 = vld [vmem:[%s6551_s27 + $0x84] sm:$0xff]   ;;  %v5567_v52 = vrot.slane %v5551_v17, 9  ;;  %v2333_v28 = vrot.slane %v2331_v34, 4  ;;  %v6449_v17 = vld [vmem:[%s6551_s27 + $0x74] sm:$0x1] }
 0x130   : > { %v4452_v2 = vsel %vm6803_vm7, %v4450_v47, %v4451_v12  ;;  %v5274_v47 = vld [vmem:[%s6551_s27 + $0x84] sm:$0xf]  ;;  %v2324_v12 = vor.u32 %v2323_v25, %v2320_v23  ;;  %v6403_v34 = vld [vmem:[%s6551_s27 + $0xb4] sm:$0xff]  }
 0x131   : > { %v8092_v5 = vsel %vm6803_vm7, %v5567_v52, %v4532_v24  ;;  %v5572_v61 = vcombine.low %v4449_v6, %v4452_v2  ;;  %v2369_v18 = vshll.u32 %v5274_v47, 16  ;;  %v5277_v6 = vld [vmem:[%s6551_s27 + $0x90] sm:$0xf]  ;;  %v6402_v2 = vld [vmem:[%s6551_s27 + $0xa8] sm:$0xff]  }
 0x132   : > { %v5584_v29 = vcombine.low %v8092_v5, %v8097_v55  ;;  %v2325_v52 = vrot.slane %v2324_v12, 4  ;;  %v2390_v23 = vshrl.u32 %v5277_v6, 16  ;;  %v2393_v25 = vshll.u32 %v5277_v6, 16 }
 0x133   : > { %v2423_v12 = vshll.u32 %v6452_v60, 16 }
 0x134   : > { %v2395_v14 = vrot.slane %v2393_v25, 5  ;;  %v6455_v25 = vld [vmem:[%s6551_s27 + $0xa4] sm:$0x1] }
 0x135   : > { %6033 = vmatmul.mubr.msk.bf16.vlgmr.msra.gmra.mrb[0].mxu0 %vm752_vm3, %v5570_v46  ;;  %v2329_v46 = vrot.slane %v2327_v35, 5  ;;  %v5280_v35 = vld [vmem:[%s6551_s27 + $0x9c] sm:$0xf]  ;;  %v8139_v6 = vrot.slane %v2423_v12, 5 }
 0x136   : > { %5879 = vmatmul.mubr.msk.bf16.gmra.mrb[16].mxu1 %vm752_vm3, %v6398_v30  ;;  %6036 = vmatprep.mubr.msk.bf16.mxu0 %vm752_vm3, %v5571_v9  ;;  %v2337_v30 = vshll.u32 %v6449_v17, 16  ;;  %v2366_v9 = vshrl.u32 %v5274_v47, 16  ;;  %v2417_v47 = vshll.u32 %v5280_v35, 16  ;;  %v6453_v17 = vld [vmem:[%s6551_s27 + $0x8c] sm:$0x1] }
 0x137   : > { %5882 = vmatprep.mubr.msk.bf16.mxu1 %vm752_vm3, %v6399_v11  ;;  %v2334_v13 = vor.u32 %v2333_v28, %v2329_v46  ;;  %v6450_v11 = vld [vmem:[%s6551_s27 + $0x88] sm:$0xf]  ;;  %v2330_v7 = vsel %vm6577_vm4, %v2325_v52, %v2329_v46 }
 0x138   : > { %v2375_v19 = vshll.u32 %v6450_v11, 16  ;;  %v2379_v41 = vshrl.u32 %v6450_v11, 16  ;;  %v2339_v0 = vrot.slane %v2337_v30, 5  ;;  %v2368_v36 = vrot.slane %v2366_v9, 4 }
 0x139   : > { %v2335_v39 = vrot.slane %v2334_v13, 4  ;;  %v2385_v30 = vshll.u32 %v6453_v17, 16  ;;  %v2392_v9 = vrot.slane %v2390_v23, 4  ;;  %v2419_v11 = vrot.slane %v2417_v47, 5 }
 0x13a   : > { %v8116_v24 = vrot.slane %v2375_v19, 5  ;;  %v2381_v49 = vrot.slane %v2379_v41, 4  ;;  %v6404_v19 = vld [vmem:[%s6551_s27 + $0xc0] sm:$0xff]  }
 0x13b   : > { %v2340_v46 = vsel %vm6577_vm4, %v2335_v39, %v2339_v0  ;;  %v5283_v39 = vld [vmem:[%s6551_s27 + $0xa8] sm:$0xf] }
 0x13c   : > { %v2382_v13 = vor.u32 %v2381_v49, %v8116_v24  ;;  %v5301_v41 = vcombine.low %v2330_v7, %v2340_v46  ;;  %v2433_v7 = vshll.u32 %v6455_v25, 16  ;;  %v2441_v45 = vshll.u32 %v5283_v39, 16 }
 0x13d   : > { %6037 = vmatmul.mubr.msk.bf16.gmra.mrb[4].mxu0 %vm752_vm3, %v5572_v61  ;;  %v6451_v61 = vld [vmem:[%s6551_s27 + $0x94] sm:$0xf] }
 0x13e   : > { %5883 = vmatmul.mubr.msk.bf16.gmra.mrb[20].mxu1 %vm752_vm3, %v6400_v51  ;;  %6040 = vmatprep.mubr.msk.bf16.mxu0 %vm752_vm3, %v5573_v10  ;;  %v2371_v10 = vrot.slane %v2369_v18, 5  ;;  %v2399_v51 = vshll.u32 %v6451_v61, 16  ;;  %v2403_v28 = vshrl.u32 %v6451_v61, 16  ;;  %v2383_v0 = vrot.slane %v2382_v13, 4 }
 0x13f   : > { %5886 = vmatprep.mubr.msk.bf16.mxu1 %vm752_vm3, %v6401_v21  ;;  %v2414_v21 = vshrl.u32 %v5280_v35, 16  ;;  %v6454_v35 = vld [vmem:[%s6551_s27 + $0x98] sm:$0x1]  ;;  %v2438_v61 = vshrl.u32 %v5283_v39, 16  ;;  %v5289_v39 = vld [vmem:[%s6551_s27 + $0xc0] sm:$0xf] }
 0x140   : > { %v2372_v15 = vor.u32 %v2371_v10, %v2368_v36  ;;  %v8136_v26 = vrot.slane %v2399_v51, 5  ;;  %v2387_v36 = vrot.slane %v2385_v30, 5  ;;  %v2396_v10 = vor.u32 %v2395_v14, %v2392_v9  ;;  %v5286_v51 = vld [vmem:[%s6551_s27 + $0xb4] sm:$0xf] }
 0x141   : > { %v2416_v18 = vrot.slane %v2414_v21, 4  ;;  %v2451_v21 = vshrl.u32 %v6456_v27, 16  ;;  %v2462_v20 = vshrl.u32 %v5286_v51, 16  ;;  %v2465_v42 = vshll.u32 %v5286_v51, 16 }
 0x142   : > { %v2373_v52 = vrot.slane %v2372_v15, 4  ;;  %v2388_v46 = vsel %vm6577_vm4, %v2383_v0, %v2387_v36  ;;  %v2397_v15 = vrot.slane %v2396_v10, 4  ;;  %v2435_v30 = vrot.slane %v2433_v7, 5 }
 0x143   : > { %v2420_v23 = vor.u32 %v2419_v11, %v2416_v18  ;;  %v2440_v9 = vrot.slane %v2438_v61, 4  ;;  %v2453_v11 = vrot.slane %v2451_v21, 4  ;;  %v6460_v61 = vld [vmem:[%s6551_s27 + $0xbc] sm:$0x1] }
 0x144   : > { %v2378_v47 = vsel %vm6577_vm4, %v2373_v52, %v8116_v24  ;;  %v2402_v0 = vsel %vm6577_vm4, %v2397_v15, %v8136_v26  ;;  %v2481_v22 = vshll.u32 %v6460_v61, 16 }
 0x145   : > { %6041 = vmatmul.mubr.msk.bf16.gmra.mrb[8].mxu0 %vm752_vm3, %v5574_v40  ;;  %v2427_v40 = vshrl.u32 %v6452_v60, 16  ;;  %v2421_v17 = vrot.slane %v2420_v23, 4  ;;  %v5303_v24 = vcombine.low %v2378_v47, %v2388_v46 }
 0x146   : > { %5887 = vmatmul.mubr.msk.bf16.gmra.mrb[24].mxu1 %vm752_vm3, %v6402_v2  ;;  %6044 = vmatprep.mubr.msk.bf16.mxu0 %vm752_vm3, %v5575_v54  ;;  %v2405_v54 = vrot.slane %v2403_v28, 4 }
 0x147   : > { %5890 = vmatprep.mubr.msk.bf16.mxu1 %vm752_vm3, %v6403_v34  ;;  %v2429_v2 = vrot.slane %v2427_v40, 4  ;;  %v2409_v34 = vshll.u32 %v6454_v35, 16  ;;  %v2426_v10 = vsel %vm6577_vm4, %v2421_v17, %v8139_v6  ;;  %v2507_v17 = vrot.slane %v2505_v57, 5 }
 0x148   : > { %v2406_v49 = vor.u32 %v2405_v54, %v8136_v26  ;;  %v2443_v54 = vrot.slane %v2441_v45, 5  ;;  %v6458_v26 = vld [vmem:[%s6551_s27 + $0xb0] sm:$0x1] }
 0x149   : > { %v2430_v28 = vor.u32 %v2429_v2, %v8139_v6  ;;  %v2411_v60 = vrot.slane %v2409_v34, 5  ;;  %v2457_v35 = vshll.u32 %v6458_v26, 16  ;;  %v2486_v34 = vshrl.u32 %v5289_v39, 16 }
 0x14a   : > { %v2407_v13 = vrot.slane %v2406_v49, 4  ;;  %v2444_v38 = vor.u32 %v2443_v54, %v2440_v9  ;;  %v2489_v6 = vshll.u32 %v5289_v39, 16  ;;  %v6459_v49 = vld [vmem:[%s6551_s27 + $0xc4] sm:$0xf] }
 0x14b   : > { %v2431_v14 = vrot.slane %v2430_v28, 4  ;;  %v2495_v23 = vshll.u32 %v6459_v49, 16  ;;  %v2499_v25 = vshrl.u32 %v6459_v49, 16  ;;  %v2459_v45 = vrot.slane %v2457_v35, 5 }
 0x14c   : > { %v2412_v36 = vsel %vm6577_vm4, %v2407_v13, %v2411_v60  ;;  %v2445_v51 = vrot.slane %v2444_v38, 4  ;;  %v2483_v60 = vrot.slane %v2481_v22, 5 }
 0x14d   : > { %6045 = vmatmul.mubr.msk.bf16.gmra.mrb[12].mxu0 %vm752_vm3, %v5576_v53  ;;  %v2447_v53 = vshll.u32 %v6456_v27, 16  ;;  %v2436_v59 = vsel %vm6577_vm4, %v2431_v14, %v2435_v30  ;;  %v5304_v44 = vcombine.low %v2402_v0, %v2412_v36  ;;  %v2488_v27 = vrot.slane %v2486_v34, 4 }
 0x14e   : > { %5891 = vmatmul.mubr.msk.bf16.gmra.mrb[28].mxu1 %vm752_vm3, %v6404_v19  ;;  %6048 = vmatprep.mubr.msk.bf16.mxu0 %vm752_vm3, %v5577_v33  ;;  %v6457_v33 = vld [vmem:[%s6551_s27 + $0xb8] sm:$0xf]  ;;  %v2464_v19 = vrot.slane %v2462_v20, 4  ;;  %v2497_v21 = vrot.slane %v2495_v23, 5  ;;  %v2501_v47 = vrot.slane %v2499_v25, 4 }
 0x14f   : > { %5912 = vmatprep.mubr.msk.bf16.mxu1 %vm752_vm3, %v5301_v41  ;;  %v2471_v12 = vshll.u32 %v6457_v33, 16  ;;  %v2475_v40 = vshrl.u32 %v6457_v33, 16  ;;  %v2449_v18 = vrot.slane %v2447_v53, 5  ;;  %v2467_v41 = vrot.slane %v2465_v42, 5 }
 0x150   : > { %v2491_v53 = vrot.slane %v2489_v6, 5 }
 0x151   : > { %v2473_v52 = vrot.slane %v2471_v12, 5  ;;  %v2477_v2 = vrot.slane %v2475_v40, 4  ;;  %v2450_v20 = vsel %vm6577_vm4, %v2445_v51, %v2449_v18  ;;  %v2502_v12 = vor.u32 %v2501_v47, %v2497_v21 }
 0x152   : > { %v2492_v33 = vor.u32 %v2491_v53, %v2488_v27 }
 0x153   : > { %v2478_v7 = vor.u32 %v2477_v2, %v2473_v52  ;;  %v2503_v13 = vrot.slane %v2502_v12, 4  ;;  %v8231_v2 = vld [vmem:[%s8345_s2] ss:$0 sm:$0xff] }
 0x154   : > { %v2493_v40 = vrot.slane %v2492_v33, 4 }
 0x155   : > { %6049 = vmatmul.mubr.msk.bf16.gmra.mrb[16].mxu0 %vm752_vm3, %v5578_v37  ;;  %v2454_v37 = vor.u32 %v2453_v11, %v2449_v18  ;;  %v2479_v15 = vrot.slane %v2478_v7, 4  ;;  %v2508_v9 = vsel %vm6577_vm4, %v2503_v13, %v2507_v17 }
 0x156   : > { %5913 = vmatmul.mubr.msk.bf16.vlgmr.msra.gmra.mrb[16].mxu1 %vm752_vm3, %v7945_v1  ;;  %6052 = vmatprep.mubr.msk.bf16.mxu0 %vm752_vm3, %v5579_v3  ;;  %v2468_v1 = vor.u32 %v2467_v41, %v2464_v19  ;;  %v5305_v3 = vcombine.low %v2426_v10, %v2436_v59  ;;  %v2498_v30 = vsel %vm6577_vm4, %v2493_v40, %v2497_v21 }
 0x157   : > { %5916 = vmatprep.mubr.msk.bf16.mxu1 %vm752_vm3, %v5303_v24  ;;  %v2455_v28 = vrot.slane %v2454_v37, 4  ;;  %v2484_v48 = vsel %vm6577_vm4, %v2479_v15, %v2483_v60  ;;  %v5308_v14 = vcombine.low %v2498_v30, %v2508_v9 }
 0x158   : > { %v2469_v46 = vrot.slane %v2468_v1, 4 }
 0x159   : > { %v2460_v42 = vsel %vm6577_vm4, %v2455_v28, %v2459_v45 }
 0x15a   : > { %v5306_v62 = vcombine.low %v2450_v20, %v2460_v42 }
 0x15d   : > { %6053 = vmatmul.mubr.msk.bf16.gmra.mrb[20].mxu0 %vm752_vm3, %v5580_v8  ;;  %v2474_v8 = vsel %vm6577_vm4, %v2469_v46, %v2473_v52 }
 0x15e   : > { %5917 = vmatmul.mubr.msk.bf16.gmra.mrb[20].mxu1 %vm752_vm3, %v5304_v44  ;;  %6056 = vmatprep.mubr.msk.bf16.mxu0 %vm752_vm3, %v5581_v56  ;;  %v5307_v56 = vcombine.low %v2474_v8, %v2484_v48 }
 0x15f   : > { %5920 = vmatprep.mubr.msk.bf16.mxu1 %vm752_vm3, %v5305_v3 }
 0x165   : > { %6057 = vmatmul.mubr.msk.bf16.gmra.mrb[24].mxu0 %vm752_vm3, %v5582_v43 }
 0x166   : > { %5921 = vmatmul.mubr.msk.bf16.gmra.mrb[24].mxu1 %vm752_vm3, %v5306_v62  ;;  %6060 = vmatprep.mubr.msk.bf16.mxu0 %vm752_vm3, %v5583_v50 }
 0x167   : > { %5924 = vmatprep.mubr.msk.bf16.mxu1 %vm752_vm3, %v5307_v56 }
 0x16d   : > { %6061 = vmatmul.mubr.msk.bf16.gmra.mrb[28].mxu0 %vm752_vm3, %v5584_v29 }
 0x16e   : > { %5925 = vmatmul.mubr.msk.bf16.gmra.mrb[28].mxu1 %vm752_vm3, %v5308_v14 }
 0x1e9   : > { %v5864_v63 = vpop.f32.mrb[0].mxu1 }
 0x1ea   : > { %v1918_v4 = vpop.f32.mrb[1].mxu1 }
 0x1eb   : > { %v5865_v43 = vpop.f32.mrb[2].mxu1 }
 0x1ec   : > { %v1921_v16 = vpop.f32.mrb[3].mxu1 }
 0x1f1   : > { %v5868_v58 = vpop.f32.mrb[4].mxu1 }
 0x1f2   : > { %v1934_v50 = vpop.f32.mrb[5].mxu1 }
 0x1f3   : > { %v5869_v54 = vpop.f32.mrb[6].mxu1 }
 0x1f4   : > { %v1937_v18 = vpop.f32.mrb[7].mxu1 }
 0x1f9   : > { %v5872_v11 = vpop.f32.mrb[8].mxu1 }
 0x1fa   : > { %v1950_v32 = vpop.f32.mrb[9].mxu1 }
 0x1fb   : > { %v5873_v24 = vpop.f32.mrb[10].mxu1 }
 0x1fc   : > { %v1953_v19 = vpop.f32.mrb[11].mxu1 }
 0x201   : > { %v5876_v41 = vpop.f32.mrb[12].mxu1 }
 0x202   : > { %v1966_v52 = vpop.f32.mrb[13].mxu1 }
 0x203   : > { %v5877_v5 = vpop.f32.mrb[14].mxu1 }
 0x204   : > { %v1969_v55 = vpop.f32.mrb[15].mxu1 }
 0x208   : > { %v6034_v29 = vpop.f32.mrb[0].mxu0 }
 0x209   : > { %v6066_v39 = vadd.f32 %v6034_v29, %v5864_v63  ;;  %v4672_v0 = vpop.f32.mrb[1].mxu0 }
 0x20a   : > { %v6067_v36 = vadd.f32 %v4672_v0, %v1918_v4  ;;  %v6035_v10 = vpop.f32.mrb[2].mxu0 }
 0x20b   : > { %v4840_v59 = vadd.f32 %v6066_v39, %v8231_v2  ;;  %v6068_v38 = vadd.f32 %v6035_v10, %v5865_v43  ;;  %v4675_v37 = vpop.f32.mrb[3].mxu0 }
 0x20c   : > { %v4838_v26 = vadd.f32 %v6067_v36, %v8231_v2  ;;  %v6069_v35 = vadd.f32 %v4675_v37, %v1921_v16 }
 0x20d   : > { %4873 = vst.msk [vmem:[%s8236_s24 + $0x10] sm:$0xff] %vm4870_vm8, %v4840_v59  ;;  %v4841_v34 = vadd.f32 %v6068_v38, %v8231_v2 }
 0x20e   : > { %4871 = vst.msk [vmem:[%s8236_s24] sm:$0xff] %vm4870_vm8, %v4838_v26  ;;  %v4839_v6 = vadd.f32 %v6069_v35, %v8231_v2 }
 0x20f   : > { %4874 = vst.msk [vmem:[%s8236_s24 + $0x18] sm:$0xff] %vm4870_vm8, %v4841_v34 }
 0x210   : > { %4872 = vst.msk [vmem:[%s8236_s24 + $0x8] sm:$0xff] %vm4870_vm8, %v4839_v6  ;;  %v6038_v49 = vpop.f32.mrb[4].mxu0 }
 0x211   : > { %v6070_v23 = vadd.f32 %v6038_v49, %v5868_v58  ;;  %v4688_v25 = vpop.f32.mrb[5].mxu0 }
 0x212   : > { %v6071_v1 = vadd.f32 %v4688_v25, %v1934_v50  ;;  %v6039_v7 = vpop.f32.mrb[6].mxu0 }
 0x213   : > { %v4844_v61 = vadd.f32 %v6070_v23, %v8231_v2  ;;  %v6072_v22 = vadd.f32 %v6039_v7, %v5869_v54  ;;  %v4691_v44 = vpop.f32.mrb[7].mxu0 }
 0x214   : > { %v4842_v3 = vadd.f32 %v6071_v1, %v8231_v2  ;;  %v6073_v51 = vadd.f32 %v4691_v44, %v1937_v18 }
 0x215   : > { %4877 = vst.msk [vmem:[%s8236_s24 + $0x30] sm:$0xff] %vm4870_vm8, %v4844_v61  ;;  %v4845_v28 = vadd.f32 %v6072_v22, %v8231_v2 }
 0x216   : > { %4875 = vst.msk [vmem:[%s8236_s24 + $0x20] sm:$0xff] %vm4870_vm8, %v4842_v3  ;;  %v4843_v45 = vadd.f32 %v6073_v51, %v8231_v2 }
 0x217   : > { %4878 = vst.msk [vmem:[%s8236_s24 + $0x38] sm:$0xff] %vm4870_vm8, %v4845_v28 }
 0x218   : > { %4876 = vst.msk [vmem:[%s8236_s24 + $0x28] sm:$0xff] %vm4870_vm8, %v4843_v45  ;;  %v6042_v27 = vpop.f32.mrb[8].mxu0 }
 0x219   : > { %v6074_v53 = vadd.f32 %v6042_v27, %v5872_v11  ;;  %v4704_v21 = vpop.f32.mrb[9].mxu0 }
 0x21a   : > { %v6075_v47 = vadd.f32 %v4704_v21, %v1950_v32  ;;  %v6043_v46 = vpop.f32.mrb[10].mxu0 }
 0x21b   : > { %v4848_v15 = vadd.f32 %v6074_v53, %v8231_v2  ;;  %v6076_v60 = vadd.f32 %v6043_v46, %v5873_v24  ;;  %v4707_v20 = vpop.f32.mrb[11].mxu0 }
 0x21c   : > { %v4846_v42 = vadd.f32 %v6075_v47, %v8231_v2  ;;  %v6077_v33 = vadd.f32 %v4707_v20, %v1953_v19 }
 0x21d   : > { %4881 = vst.msk [vmem:[%s8236_s24 + $0x50] sm:$0xff] %vm4870_vm8, %v4848_v15  ;;  %v4849_v12 = vadd.f32 %v6076_v60, %v8231_v2 }
 0x21e   : > { %4879 = vst.msk [vmem:[%s8236_s24 + $0x40] sm:$0xff] %vm4870_vm8, %v4846_v42  ;;  %v4847_v31 = vadd.f32 %v6077_v33, %v8231_v2 }
 0x21f   : > { %4882 = vst.msk [vmem:[%s8236_s24 + $0x58] sm:$0xff] %vm4870_vm8, %v4849_v12 }
 0x220   : > { %4880 = vst.msk [vmem:[%s8236_s24 + $0x48] sm:$0xff] %vm4870_vm8, %v4847_v31  ;;  %v6046_v57 = vpop.f32.mrb[12].mxu0 }
 0x221   : > { %v6078_v8 = vadd.f32 %v6046_v57, %v5876_v41  ;;  %v4720_v48 = vpop.f32.mrb[13].mxu0 }
 0x222   : > { %v6079_v62 = vadd.f32 %v4720_v48, %v1966_v52  ;;  %v6047_v56 = vpop.f32.mrb[14].mxu0 }
 0x223   : > { %v4852_v40 = vadd.f32 %v6078_v8, %v8231_v2  ;;  %v6080_v13 = vadd.f32 %v6047_v56, %v5877_v5  ;;  %v4723_v17 = vpop.f32.mrb[15].mxu0 }
 0x224   : > { %v4850_v30 = vadd.f32 %v6079_v62, %v8231_v2  ;;  %v6081_v9 = vadd.f32 %v4723_v17, %v1969_v55 }
 0x225   : > { %4885 = vst.msk [vmem:[%s8236_s24 + $0x70] sm:$0xff] %vm4870_vm8, %v4852_v40  ;;  %v4853_v14 = vadd.f32 %v6080_v13, %v8231_v2 }
 0x226   : > { %4883 = vst.msk [vmem:[%s8236_s24 + $0x60] sm:$0xff] %vm4870_vm8, %v4850_v30  ;;  %v4851_v63 = vadd.f32 %v6081_v9, %v8231_v2 }
 0x227   : > { %4886 = vst.msk [vmem:[%s8236_s24 + $0x78] sm:$0xff] %vm4870_vm8, %v4853_v14 }
 0x228   : > { %4884 = vst.msk [vmem:[%s8236_s24 + $0x68] sm:$0xff] %vm4870_vm8, %v4851_v63  ;;  %v6050_v4 = vpop.f32.mrb[16].mxu0 }
 0x229   : > { %v5914_v43 = vpop.f32.mrb[16].mxu1  ;;  %v4736_v16 = vpop.f32.mrb[17].mxu0 }
 0x22a   : > { %v6082_v58 = vadd.f32 %v6050_v4, %v5914_v43  ;;  %v2708_v50 = vpop.f32.mrb[17].mxu1  ;;  %v6051_v54 = vpop.f32.mrb[18].mxu0 }
 0x22b   : > { %v6083_v18 = vadd.f32 %v4736_v16, %v2708_v50  ;;  %v5915_v11 = vpop.f32.mrb[18].mxu1  ;;  %v4739_v32 = vpop.f32.mrb[19].mxu0 }
 0x22c   : > { %v4856_v24 = vadd.f32 %v6082_v58, %v8231_v2  ;;  %v6084_v19 = vadd.f32 %v6051_v54, %v5915_v11  ;;  %v2711_v41 = vpop.f32.mrb[19].mxu1 }
 0x22d   : > { %v4854_v52 = vadd.f32 %v6083_v18, %v8231_v2  ;;  %v6085_v5 = vadd.f32 %v4739_v32, %v2711_v41 }
 0x22e   : > { %4889 = vst.msk [vmem:[%s8236_s24 + $0x90] sm:$0xff] %vm4870_vm8, %v4856_v24  ;;  %v4857_v55 = vadd.f32 %v6084_v19, %v8231_v2 }
 0x22f   : > { %4887 = vst.msk [vmem:[%s8236_s24 + $0x80] sm:$0xff] %vm4870_vm8, %v4854_v52  ;;  %v4855_v29 = vadd.f32 %v6085_v5, %v8231_v2 }
 0x230   : > { %4890 = vst.msk [vmem:[%s8236_s24 + $0x98] sm:$0xff] %vm4870_vm8, %v4857_v55  ;;  %v6054_v39 = vpop.f32.mrb[20].mxu0 }
 0x231   : > { %4888 = vst.msk [vmem:[%s8236_s24 + $0x88] sm:$0xff] %vm4870_vm8, %v4855_v29  ;;  %v5918_v0 = vpop.f32.mrb[20].mxu1  ;;  %v4752_v36 = vpop.f32.mrb[21].mxu0 }
 0x232   : > { %v6086_v10 = vadd.f32 %v6054_v39, %v5918_v0  ;;  %v2724_v59 = vpop.f32.mrb[21].mxu1  ;;  %v6055_v38 = vpop.f32.mrb[22].mxu0 }
 0x233   : > { %v6087_v37 = vadd.f32 %v4752_v36, %v2724_v59  ;;  %v5919_v26 = vpop.f32.mrb[22].mxu1  ;;  %v4755_v35 = vpop.f32.mrb[23].mxu0 }
 0x234   : > { %v4860_v34 = vadd.f32 %v6086_v10, %v8231_v2  ;;  %v6088_v6 = vadd.f32 %v6055_v38, %v5919_v26  ;;  %v2727_v49 = vpop.f32.mrb[23].mxu1 }
 0x235   : > { %v4858_v23 = vadd.f32 %v6087_v37, %v8231_v2  ;;  %v6089_v25 = vadd.f32 %v4755_v35, %v2727_v49 }
 0x236   : > { %4893 = vst.msk [vmem:[%s8236_s24 + $0xb0] sm:$0xff] %vm4870_vm8, %v4860_v34  ;;  %v4861_v1 = vadd.f32 %v6088_v6, %v8231_v2 }
 0x237   : > { %4891 = vst.msk [vmem:[%s8236_s24 + $0xa0] sm:$0xff] %vm4870_vm8, %v4858_v23  ;;  %v4859_v7 = vadd.f32 %v6089_v25, %v8231_v2 }
 0x238   : > { %4894 = vst.msk [vmem:[%s8236_s24 + $0xb8] sm:$0xff] %vm4870_vm8, %v4861_v1  ;;  %v6058_v61 = vpop.f32.mrb[24].mxu0 }
 0x239   : > { %4892 = vst.msk [vmem:[%s8236_s24 + $0xa8] sm:$0xff] %vm4870_vm8, %v4859_v7  ;;  %v5922_v22 = vpop.f32.mrb[24].mxu1  ;;  %v4768_v44 = vpop.f32.mrb[25].mxu0 }
 0x23a   : > { %v6090_v3 = vadd.f32 %v6058_v61, %v5922_v22  ;;  %v2740_v51 = vpop.f32.mrb[25].mxu1  ;;  %v6059_v28 = vpop.f32.mrb[26].mxu0 }
 0x23b   : > { %v6091_v45 = vadd.f32 %v4768_v44, %v2740_v51  ;;  %v5923_v27 = vpop.f32.mrb[26].mxu1  ;;  %v4771_v53 = vpop.f32.mrb[27].mxu0 }
 0x23c   : > { %v4864_v21 = vadd.f32 %v6090_v3, %v8231_v2  ;;  %v6092_v47 = vadd.f32 %v6059_v28, %v5923_v27  ;;  %v2743_v46 = vpop.f32.mrb[27].mxu1 }
 0x23d   : > { %v4862_v15 = vadd.f32 %v6091_v45, %v8231_v2  ;;  %v6093_v60 = vadd.f32 %v4771_v53, %v2743_v46 }
 0x23e   : > { %4897 = vst.msk [vmem:[%s8236_s24 + $0xd0] sm:$0xff] %vm4870_vm8, %v4864_v21  ;;  %v4865_v20 = vadd.f32 %v6092_v47, %v8231_v2 }
 0x23f   : > { %4895 = vst.msk [vmem:[%s8236_s24 + $0xc0] sm:$0xff] %vm4870_vm8, %v4862_v15  ;;  %v4863_v42 = vadd.f32 %v6093_v60, %v8231_v2 }
 0x240   : > { %4898 = vst.msk [vmem:[%s8236_s24 + $0xd8] sm:$0xff] %vm4870_vm8, %v4865_v20  ;;  %v6062_v33 = vpop.f32.mrb[28].mxu0 }
 0x241   : > { %4896 = vst.msk [vmem:[%s8236_s24 + $0xc8] sm:$0xff] %vm4870_vm8, %v4863_v42  ;;  %v5926_v12 = vpop.f32.mrb[28].mxu1  ;;  %v4784_v31 = vpop.f32.mrb[29].mxu0 }
 0x242   : > { %v6094_v57 = vadd.f32 %v6062_v33, %v5926_v12  ;;  %v2756_v8 = vpop.f32.mrb[29].mxu1  ;;  %v6063_v48 = vpop.f32.mrb[30].mxu0 }
 0x243   : > { %v6095_v62 = vadd.f32 %v4784_v31, %v2756_v8  ;;  %v5927_v56 = vpop.f32.mrb[30].mxu1  ;;  %v4787_v40 = vpop.f32.mrb[31].mxu0 }
 0x244   : > { %v4868_v13 = vadd.f32 %v6094_v57, %v8231_v2  ;;  %v6096_v17 = vadd.f32 %v6063_v48, %v5927_v56  ;;  %v2759_v30 = vpop.f32.mrb[31].mxu1 }
 0x245   : > { %v4866_v9 = vadd.f32 %v6095_v62, %v8231_v2  ;;  %v6097_v14 = vadd.f32 %v4787_v40, %v2759_v30 }
 0x246   : > { %4901 = vst.msk [vmem:[%s8236_s24 + $0xf0] sm:$0xff] %vm4870_vm8, %v4868_v13  ;;  %v4869_v63 = vadd.f32 %v6096_v17, %v8231_v2 }
 0x247   : > { %4899 = vst.msk [vmem:[%s8236_s24 + $0xe0] sm:$0xff] %vm4870_vm8, %v4866_v9  ;;  %v4867_v4 = vadd.f32 %v6097_v14, %v8231_v2 }
 0x248   : > { %4902 = vst.msk [vmem:[%s8236_s24 + $0xf8] sm:$0xff] %vm4870_vm8, %v4869_v63 }
 0x249   : > { %4900 = vst.msk [vmem:[%s8236_s24 + $0xe8] sm:$0xff] %vm4870_vm8, %v4867_v4 }
 0x24a PF: > { %s13_s14 = sadd.s32 1, %s6484_s14   ;;  %s8414_s12 = smov %s6480_s13 }
 0x24b   : > { %p10_p5 = scmp.ge.s32.totalorder %s13_s14, 4   ;;  %s8415_s13 = smov %s8417_s15 }
 0x24d   :  { %12 = sbr.rel (!%p10_p5) target bundleno = 2 (0x2), region = 79 }

</bundles_post_ra>
